<compile_context>
chip_gen: v6e
topology: v6e:2x2x1
jax: 0.10.0
libtpu: 0.0.40
codegen_flags: <defaults>
</compile_context>

<pallas_src>
import functools

import jax
import jax.numpy as jnp
from jax.experimental import pallas as pl
from jax.experimental.pallas import tpu as pltpu

_EPS = 1e-5


# --------------------------------- kernels ----------------------------------

def _conv1_kernel(xph_ref, w_ref, b_ref, z_ref, st_ref, *, s, Ho, Wo, mm_dtype):
    """3x3 conv (stride s).  Taps are extracted in-kernel from the phase-split
    padded image and folded into one K=9*Cin MXU matmul.  Also emits the
    per-image sum / sum-of-squares used for BatchNorm batch statistics."""
    Cin = xph_ref.shape[-1]
    M = Ho * Wo

    xim = xph_ref[0]                                      # (s*s, Hph, Wph, Cin)
    taps = []
    for kh in range(3):
        for kw in range(3):
            ph = (kh % s) * s + (kw % s)
            taps.append(xim[ph,
                            kh // s: kh // s + Ho,
                            kw // s: kw // s + Wo, :])    # (Ho, Wo, Cin)
    patches = jnp.concatenate(taps, axis=-1).reshape(M, 9 * Cin)

    z = jnp.dot(patches.astype(mm_dtype), w_ref[...],
                preferred_element_type=jnp.float32) + b_ref[...]
    z_ref[0] = z
    st_ref[0] = jnp.concatenate(
        [jnp.sum(z, axis=0, keepdims=True),
         jnp.sum(z * z, axis=0, keepdims=True)], axis=0)


def _bn_relu_conv2_kernel(z1_ref, mu_ref, rs_ref, g_ref, be_ref, w_ref, b_ref,
                          z2_ref, st_ref, pad_scr, *, Ho, Wo, mm_dtype):
    """BN1 (precomputed batch stats) + ReLU, then 3x3 conv (stride 1) with a
    border-only-zeroed VMEM pad scratch, tap-folded into one matmul."""
    C = z1_ref.shape[-1]
    M = Ho * Wo

    y1 = jnp.maximum((z1_ref[0] - mu_ref[...]) * rs_ref[...] * g_ref[...]
                     + be_ref[...], 0.0)

    # zero only the 1-pixel border; the interior is fully overwritten each step
    pad_scr[0:1, :, :] = jnp.zeros((1, Wo + 2, C), jnp.float32)
    pad_scr[Ho + 1:Ho + 2, :, :] = jnp.zeros((1, Wo + 2, C), jnp.float32)
    pad_scr[:, 0:1, :] = jnp.zeros((Ho + 2, 1, C), jnp.float32)
    pad_scr[:, Wo + 1:Wo + 2, :] = jnp.zeros((Ho + 2, 1, C), jnp.float32)
    pad_scr[1:Ho + 1, 1:Wo + 1, :] = y1.reshape(Ho, Wo, C)

    taps = [pad_scr[kh:kh + Ho, kw:kw + Wo, :]
            for kh in range(3) for kw in range(3)]
    patches = jnp.concatenate(taps, axis=-1).reshape(M, 9 * C)

    z2 = jnp.dot(patches.astype(mm_dtype), w_ref[...],
                 preferred_element_type=jnp.float32) + b_ref[...]
    z2_ref[0] = z2
    st_ref[0] = jnp.concatenate(
        [jnp.sum(z2, axis=0, keepdims=True),
         jnp.sum(z2 * z2, axis=0, keepdims=True)], axis=0)


def _bn_relu_residual_kernel(z2_ref, xsc_ref, mu_ref, rs_ref, g_ref, be_ref,
                             w3_ref, b3_ref, out_ref, *, use_1x1conv, mm_dtype):
    """BN2 + ReLU, optional 1x1-conv shortcut, residual add.  Lane-dense
    (rows, channels) output."""
    y2 = jnp.maximum((z2_ref[0] - mu_ref[...]) * rs_ref[...] * g_ref[...]
                     + be_ref[...], 0.0)
    if use_1x1conv:
        sc = jnp.dot(xsc_ref[0].astype(mm_dtype), w3_ref[...],
                     preferred_element_type=jnp.float32) + b3_ref[...]
    else:
        sc = xsc_ref[0]
    out_ref[0] = y2 + sc


# --------------------------------- wrapper ----------------------------------

def _compiler_params(active_block_bytes):
    # batch-grid axis is fully independent -> "parallel" (both TCs on v7x);
    # vmem limit from the actual per-step footprint, clamped to v7x's 64 MiB.
    limit = int(min(max(3 * active_block_bytes + (8 << 20), 32 << 20), 64 << 20))
    return pltpu.CompilerParams(dimension_semantics=("parallel",),
                                vmem_limit_bytes=limit)


def _finalize_stats(st, m_total):
    tot = jnp.sum(st, axis=0)                      # (2, C): [sum; sumsq]
    mean = tot[0:1] / m_total                      # (1, C)
    var = jnp.maximum(tot[1:2] / m_total - mean * mean, 0.0)
    rstd = jax.lax.rsqrt(var + _EPS)
    return mean, rstd


def resblock_forward(x_nchw, params, use_1x1conv, strides, *,
                     matmul_dtype=jnp.float32):
    N, Cin, H, W = x_nchw.shape
    Cout = params["w1"].shape[-1]
    s = int(strides)
    Ho = (H - 1) // s + 1
    Wo = (W - 1) // s + 1
    Mimg = Ho * Wo
    Mtot = N * Mimg
    if not use_1x1conv:
        assert s == 1 and Cin == Cout, (
            "identity shortcut requires strides == 1 and Cin == Cout")

    x = jnp.transpose(x_nchw, (0, 2, 3, 1)).astype(jnp.float32)        # NHWC

    # Phase-split zero-padded input: phases[n, ph_h*s+ph_w, i, j, c] =
    # x_pad[n, s*i+ph_h, s*j+ph_w, c], so every conv1 tap is a *contiguous*
    # slice even for strided convs (no 9x im2col duplication in HBM).
    Hph = Ho + 2 // s
    Wph = Wo + 2 // s
    Hneed, Wneed = s * Hph, s * Wph
    xp = jnp.pad(x, ((0, 0),
                     (1, max(Hneed - H - 1, 0)),
                     (1, max(Wneed - W - 1, 0)),
                     (0, 0)))[:, :Hneed, :Wneed, :]
    phases = xp.reshape(N, Hph, s, Wph, s, Cin).transpose(0, 2, 4, 1, 3, 5)
    phases = phases.reshape(N, s * s, Hph, Wph, Cin)

    w1f = params["w1"].reshape(9 * Cin, Cout).astype(matmul_dtype)
    w2f = params["w2"].reshape(9 * Cout, Cout).astype(matmul_dtype)
    w3f = params["w3"].astype(matmul_dtype)

    def full(a):
        return pl.BlockSpec(a.shape, lambda n, nd=a.ndim: (0,) * nd)

    f32 = jnp.float32
    row_spec = pl.BlockSpec((1, Mimg, Cout), lambda n: (n, 0, 0))
    st_spec = pl.BlockSpec((1, 2, Cout), lambda n: (n, 0, 0))

    # -------- kernel 1: conv1 + bias + per-image BN1 partial stats ----------
    k1_bytes = 4 * (s * s * Hph * Wph * Cin + 2 * Mimg * Cout
                    + Mimg * 9 * Cin + 9 * Cin * Cout)
    z1, st1 = pl.pallas_call(
        functools.partial(_conv1_kernel, s=s, Ho=Ho, Wo=Wo,
                          mm_dtype=matmul_dtype),
        grid=(N,),
        in_specs=[pl.BlockSpec((1, s * s, Hph, Wph, Cin),
                               lambda n: (n, 0, 0, 0, 0)),
                  full(w1f), full(params["b1"])],
        out_specs=(row_spec, st_spec),
        out_shape=(jax.ShapeDtypeStruct((N, Mimg, Cout), f32),
                   jax.ShapeDtypeStruct((N, 2, Cout), f32)),
        compiler_params=_compiler_params(k1_bytes),
    )(phases, w1f, params["b1"])
    mu1, rs1 = _finalize_stats(st1, Mtot)

    # -------- kernel 2: BN1 + ReLU -> conv2 + bias + BN2 partial stats ------
    k2_bytes = 4 * (3 * Mimg * Cout + (Ho + 2) * (Wo + 2) * Cout
                    + Mimg * 9 * Cout + 9 * Cout * Cout)
    z2, st2 = pl.pallas_call(
        functools.partial(_bn_relu_conv2_kernel, Ho=Ho, Wo=Wo,
                          mm_dtype=matmul_dtype),
        grid=(N,),
        in_specs=[row_spec,
                  full(mu1), full(rs1), full(params["g1"]), full(params["be1"]),
                  full(w2f), full(params["b2"])],
        out_specs=(row_spec, st_spec),
        out_shape=(jax.ShapeDtypeStruct((N, Mimg, Cout), f32),
                   jax.ShapeDtypeStruct((N, 2, Cout), f32)),
        scratch_shapes=[pltpu.VMEM((Ho + 2, Wo + 2, Cout), f32)],
        compiler_params=_compiler_params(k2_bytes),
    )(z1, mu1, rs1, params["g1"], params["be1"], w2f, params["b2"])
    mu2, rs2 = _finalize_stats(st2, Mtot)

    # -------- kernel 3: BN2 + ReLU + (1x1-conv | identity) + residual -------
    x_sc = x[:, ::s, ::s, :][:, :Ho, :Wo, :].reshape(N, Mimg, Cin)
    k3_bytes = 4 * (3 * Mimg * Cout + Mimg * Cin + Cin * Cout)
    out = pl.pallas_call(
        functools.partial(_bn_relu_residual_kernel, use_1x1conv=use_1x1conv,
                          mm_dtype=matmul_dtype),
        grid=(N,),
        in_specs=[row_spec,
                  pl.BlockSpec((1, Mimg, Cin), lambda n: (n, 0, 0)),
                  full(mu2), full(rs2), full(params["g2"]), full(params["be2"]),
                  full(w3f), full(params["b3"])],
        out_specs=row_spec,
        out_shape=jax.ShapeDtypeStruct((N, Mimg, Cout), f32),
        compiler_params=_compiler_params(k3_bytes),
    )(z2, x_sc, mu2, rs2, params["g2"], params["be2"], w3f, params["b3"])

    return jnp.transpose(out.reshape(N, Ho, Wo, Cout), (0, 3, 1, 2))   # NCHW


# ---------------- pure-JAX reference (correctness check) ---------------------

def ref_forward(x_nchw, p, use_1x1conv, strides):
    dn = ("NHWC", "HWIO", "NHWC")
    x = jnp.transpose(x_nchw, (0, 2, 3, 1)).astype(jnp.float32)

    def conv(inp, w, b, s, pad):
        y = jax.lax.conv_general_dilated(inp, w, (s, s), pad,
                                         dimension_numbers=dn)
        return y + b.reshape(1, 1, 1, -1)

    def bn_relu(y, g, be):
        mean = jnp.mean(y, axis=(0, 1, 2), keepdims=True)
        var = jnp.mean(jnp.square(y - mean), axis=(0, 1, 2), keepdims=True)
        yn = (y - mean) * jax.lax.rsqrt(var + _EPS)
        return jnp.maximum(yn * g.reshape(1, 1, 1, -1) + be.reshape(1, 1, 1, -1),
                           0.0)

    y = bn_relu(conv(x, p["w1"], p["b1"], strides, ((1, 1), (1, 1))),
                p["g1"], p["be1"])
    y = bn_relu(conv(y, p["w2"], p["b2"], 1, ((1, 1), (1, 1))),
                p["g2"], p["be2"])
    if use_1x1conv:
        cin, cout = p["w3"].shape
        sc = jax.lax.conv_general_dilated(x, p["w3"].reshape(1, 1, cin, cout),
                                          (strides, strides), ((0, 0), (0, 0)),
                                          dimension_numbers=dn)
        sc = sc + p["b3"].reshape(1, 1, 1, -1)
    else:
        sc = x
    return jnp.transpose(y + sc, (0, 3, 1, 2))


def init_params(key, cin, cout):
    ks = jax.random.split(key, 10)
    f = lambda k, shape, scale: scale * jax.random.normal(k, shape, jnp.float32)
    return dict(
        w1=f(ks[0], (3, 3, cin, cout), (9 * cin) ** -0.5),
        b1=f(ks[1], (1, cout), 0.1),
        w2=f(ks[2], (3, 3, cout, cout), (9 * cout) ** -0.5),
        b2=f(ks[3], (1, cout), 0.1),
        g1=1.0 + f(ks[4], (1, cout), 0.1),
        be1=f(ks[5], (1, cout), 0.1),
        g2=1.0 + f(ks[6], (1, cout), 0.1),
        be2=f(ks[7], (1, cout), 0.1),
        w3=f(ks[8], (cin, cout), cin ** -0.5),
        b3=f(ks[9], (1, cout), 0.1),
    )


if __name__ == "__main__":
    key = jax.random.PRNGKey(0)
    configs = [
        dict(N=2, Cin=8, Cout=8, H=16, W=16, use_1x1conv=False, strides=1,
             mm=jnp.float32, tol=3e-3),
        dict(N=2, Cin=4, Cout=8, H=16, W=16, use_1x1conv=True, strides=2,
             mm=jnp.float32, tol=3e-3),
        dict(N=2, Cin=4, Cout=8, H=15, W=15, use_1x1conv=True, strides=2,
             mm=jnp.float32, tol=3e-3),
        # bf16 MXU path smoke test (f32 accumulation), looser tolerance
        dict(N=2, Cin=8, Cout=8, H=16, W=16, use_1x1conv=False, strides=1,
             mm=jnp.bfloat16, tol=1e-1),
    ]
    for i, cfg in enumerate(configs):
        kx, kp = jax.random.split(jax.random.fold_in(key, i))
        x = jax.random.normal(kx, (cfg["N"], cfg["Cin"], cfg["H"], cfg["W"]),
                              jnp.float32)
        params = init_params(kp, cfg["Cin"], cfg["Cout"])
        out = resblock_forward(x, params, cfg["use_1x1conv"], cfg["strides"],
                               matmul_dtype=cfg["mm"])
        out = jax.block_until_ready(out)
        ref = ref_forward(x, params, cfg["use_1x1conv"], cfg["strides"])
        assert out.shape == ref.shape, (out.shape, ref.shape)
        err = float(jnp.max(jnp.abs(out - ref)))
        assert err < cfg["tol"], f"config {i}: max abs err {err}"
    print("KERNEL_OK")
</pallas_src>

<mosaic_0001>
module attributes {stable_mosaic.version = 11 : i64} {
  func.func @_conv1_kernel(%arg0: i32, %arg1: memref<1x1x18x18x8xf32, #tpu.memory_space<vmem>>, %arg2: memref<72x8xf32, #tpu.memory_space<vmem>>, %arg3: memref<1x8xf32, #tpu.memory_space<vmem>>, %arg4: memref<1x256x8xf32, #tpu.memory_space<vmem>>, %arg5: memref<1x2x8xf32, #tpu.memory_space<vmem>>) attributes {dimension_semantics = [#tpu.dimension_semantics<parallel>], iteration_bounds = array<i64: 2>, scalar_prefetch = 0 : i64, scratch_operands = 0 : i64, tpu.core_type = #tpu.core_type<tc>, window_params = [{transform_indices = @transform_0, window_bounds = array<i64: 1, 1, 18, 18, 8>}, {pipeline_mode = #tpu.pipeline_mode<synchronous>, transform_indices = @transform_1, window_bounds = array<i64: 72, 8>}, {pipeline_mode = #tpu.pipeline_mode<synchronous>, transform_indices = @transform_2, window_bounds = array<i64: 1, 8>}, {transform_indices = @transform_3, window_bounds = array<i64: 1, 256, 8>}, {transform_indices = @transform_4, window_bounds = array<i64: 1, 2, 8>}]} {
    %c0 = arith.constant 0 : index
    %c0_0 = arith.constant 0 : index
    %c0_1 = arith.constant 0 : index
    %c0_2 = arith.constant 0 : index
    %c0_3 = arith.constant 0 : index
    %0 = vector.load %arg1[%c0, %c0_0, %c0_1, %c0_2, %c0_3] : memref<1x1x18x18x8xf32, #tpu.memory_space<vmem>>, vector<1x1x18x18x8xf32>
    %1 = vector.shape_cast %0 : vector<1x1x18x18x8xf32> to vector<1x18x18x8xf32>
    %2 = vector.extract_strided_slice %1 {offsets = [0, 0, 0, 0], sizes = [1, 16, 16, 8], strides = [1, 1, 1, 1]} : vector<1x18x18x8xf32> to vector<1x16x16x8xf32>
    %3 = vector.shape_cast %2 : vector<1x16x16x8xf32> to vector<16x16x8xf32>
    %4 = vector.extract_strided_slice %1 {offsets = [0, 0, 1, 0], sizes = [1, 16, 16, 8], strides = [1, 1, 1, 1]} : vector<1x18x18x8xf32> to vector<1x16x16x8xf32>
    %5 = vector.shape_cast %4 : vector<1x16x16x8xf32> to vector<16x16x8xf32>
    %6 = vector.extract_strided_slice %1 {offsets = [0, 0, 2, 0], sizes = [1, 16, 16, 8], strides = [1, 1, 1, 1]} : vector<1x18x18x8xf32> to vector<1x16x16x8xf32>
    %7 = vector.shape_cast %6 : vector<1x16x16x8xf32> to vector<16x16x8xf32>
    %8 = vector.extract_strided_slice %1 {offsets = [0, 1, 0, 0], sizes = [1, 16, 16, 8], strides = [1, 1, 1, 1]} : vector<1x18x18x8xf32> to vector<1x16x16x8xf32>
    %9 = vector.shape_cast %8 : vector<1x16x16x8xf32> to vector<16x16x8xf32>
    %10 = vector.extract_strided_slice %1 {offsets = [0, 1, 1, 0], sizes = [1, 16, 16, 8], strides = [1, 1, 1, 1]} : vector<1x18x18x8xf32> to vector<1x16x16x8xf32>
    %11 = vector.shape_cast %10 : vector<1x16x16x8xf32> to vector<16x16x8xf32>
    %12 = vector.extract_strided_slice %1 {offsets = [0, 1, 2, 0], sizes = [1, 16, 16, 8], strides = [1, 1, 1, 1]} : vector<1x18x18x8xf32> to vector<1x16x16x8xf32>
    %13 = vector.shape_cast %12 : vector<1x16x16x8xf32> to vector<16x16x8xf32>
    %14 = vector.extract_strided_slice %1 {offsets = [0, 2, 0, 0], sizes = [1, 16, 16, 8], strides = [1, 1, 1, 1]} : vector<1x18x18x8xf32> to vector<1x16x16x8xf32>
    %15 = vector.shape_cast %14 : vector<1x16x16x8xf32> to vector<16x16x8xf32>
    %16 = vector.extract_strided_slice %1 {offsets = [0, 2, 1, 0], sizes = [1, 16, 16, 8], strides = [1, 1, 1, 1]} : vector<1x18x18x8xf32> to vector<1x16x16x8xf32>
    %17 = vector.shape_cast %16 : vector<1x16x16x8xf32> to vector<16x16x8xf32>
    %18 = vector.extract_strided_slice %1 {offsets = [0, 2, 2, 0], sizes = [1, 16, 16, 8], strides = [1, 1, 1, 1]} : vector<1x18x18x8xf32> to vector<1x16x16x8xf32>
    %19 = vector.shape_cast %18 : vector<1x16x16x8xf32> to vector<16x16x8xf32>
    %20 = tpu.concatenate %3, %5, %7, %9, %11, %13, %15, %17, %19 in 2 : vector<16x16x8xf32>, vector<16x16x8xf32>, vector<16x16x8xf32>, vector<16x16x8xf32>, vector<16x16x8xf32>, vector<16x16x8xf32>, vector<16x16x8xf32>, vector<16x16x8xf32>, vector<16x16x8xf32> -> vector<16x16x72xf32>
    %21 = vector.shape_cast %20 : vector<16x16x72xf32> to vector<256x72xf32>
    %c0_4 = arith.constant 0 : index
    %c0_5 = arith.constant 0 : index
    %22 = vector.load %arg2[%c0_4, %c0_5] : memref<72x8xf32, #tpu.memory_space<vmem>>, vector<72x8xf32>
    %cst = arith.constant dense<0.000000e+00> : vector<256x8xf32>
    %23 = tpu.matmul %21, %22, %cst {dimension_numbers = #tpu.dot_dimension_numbers<[1], [0], [0], [1], [0, 0, 1, 1], [], []>} : vector<256x72xf32>, vector<72x8xf32>, vector<256x8xf32> -> vector<256x8xf32>
    %c0_6 = arith.constant 0 : index
    %c0_7 = arith.constant 0 : index
    %24 = vector.load %arg3[%c0_6, %c0_7] : memref<1x8xf32, #tpu.memory_space<vmem>>, vector<1x8xf32>
    %25 = vector.broadcast %24 : vector<1x8xf32> to vector<256x8xf32>
    %26 = arith.addf %23, %25 : vector<256x8xf32>
    %c0_8 = arith.constant 0 : index
    %c0_9 = arith.constant 0 : index
    %c0_10 = arith.constant 0 : index
    %27 = vector.load %arg4[%c0_8, %c0_9, %c0_10] : memref<1x256x8xf32, #tpu.memory_space<vmem>>, vector<1x256x8xf32>
    %28 = vector.shape_cast %27 : vector<1x256x8xf32> to vector<256x8xf32>
    %29 = vector.shape_cast %26 : vector<256x8xf32> to vector<1x256x8xf32>
    tpu.vector_store %arg4[%c0_8, %c0_9, %c0_10], %29 {strides = array<i32>} : memref<1x256x8xf32, #tpu.memory_space<vmem>>, vector<1x256x8xf32>,
    %cst_11 = arith.constant dense<0.000000e+00> : vector<8xf32>
    %30 = vector.multi_reduction <add>, %26, %cst_11 [0] : vector<256x8xf32> to vector<8xf32>
    %31 = vector.shape_cast %30 : vector<8xf32> to vector<1x8xf32>
    %32 = arith.mulf %26, %26 : vector<256x8xf32>
    %cst_12 = arith.constant dense<0.000000e+00> : vector<8xf32>
    %33 = vector.multi_reduction <add>, %32, %cst_12 [0] : vector<256x8xf32> to vector<8xf32>
    %34 = vector.shape_cast %33 : vector<8xf32> to vector<1x8xf32>
    %35 = tpu.concatenate %31, %34 in 0 : vector<1x8xf32>, vector<1x8xf32> -> vector<2x8xf32>
    %c0_13 = arith.constant 0 : index
    %c0_14 = arith.constant 0 : index
    %c0_15 = arith.constant 0 : index
    %36 = vector.load %arg5[%c0_13, %c0_14, %c0_15] : memref<1x2x8xf32, #tpu.memory_space<vmem>>, vector<1x2x8xf32>
    %37 = vector.shape_cast %36 : vector<1x2x8xf32> to vector<2x8xf32>
    %38 = vector.shape_cast %35 : vector<2x8xf32> to vector<1x2x8xf32>
    tpu.vector_store %arg5[%c0_13, %c0_14, %c0_15], %38 {strides = array<i32>} : memref<1x2x8xf32, #tpu.memory_space<vmem>>, vector<1x2x8xf32>,
    return
  }
  func.func @transform_0(%arg0: i32) -> (i32, i32, i32, i32, i32) {
    %c0_i32 = arith.constant 0 : i32
    %c0_i32_0 = arith.constant 0 : i32
    %c0_i32_1 = arith.constant 0 : i32
    %c0_i32_2 = arith.constant 0 : i32
    %c0_i32_3 = arith.constant 0 : i32
    return %arg0, %c0_i32, %c0_i32_0, %c0_i32_1, %c0_i32_2 : i32, i32, i32, i32, i32
  }
  func.func @transform_1(%arg0: i32) -> (i32, i32) {
    %c0_i32 = arith.constant 0 : i32
    %c0_i32_0 = arith.constant 0 : i32
    %c0_i32_1 = arith.constant 0 : i32
    return %c0_i32, %c0_i32_0 : i32, i32
  }
  func.func @transform_2(%arg0: i32) -> (i32, i32) {
    %c0_i32 = arith.constant 0 : i32
    %c0_i32_0 = arith.constant 0 : i32
    %c0_i32_1 = arith.constant 0 : i32
    return %c0_i32, %c0_i32_0 : i32, i32
  }
  func.func @transform_3(%arg0: i32) -> (i32, i32, i32) {
    %c0_i32 = arith.constant 0 : i32
    %c0_i32_0 = arith.constant 0 : i32
    %c0_i32_1 = arith.constant 0 : i32
    return %arg0, %c0_i32, %c0_i32_0 : i32, i32, i32
  }
  func.func @transform_4(%arg0: i32) -> (i32, i32, i32) {
    %c0_i32 = arith.constant 0 : i32
    %c0_i32_0 = arith.constant 0 : i32
    %c0_i32_1 = arith.constant 0 : i32
    return %arg0, %c0_i32, %c0_i32_0 : i32, i32, i32
  }
}

</mosaic_0001>

<bundles_post_ra>
// kernel: tpu_custom_call.1
= control target key start
LH: loop header
LB: loop body
LE: loop exit
PB: predicated region body
PF: predicated region fallthrough
CT: control target
= control target key end

     0   :  { %10 = vsyncpa [#allocation3], 0  ;;  %s4382_s0 = inlined_call_operand.vmem [shape: f32[2,1,18,18,8], index: 0, kind: input, shape index: {}]   ;;  %s4383_s1 = inlined_call_operand.vmem [shape: f32[72,8], index: 1, kind: input, shape index: {}]   ;;  %s4384_s2 = inlined_call_operand.vmem [shape: f32[1,8], index: 2, kind: input, shape index: {}]   ;;  %s4385_s3 = inlined_call_operand.vmem [shape: f32[2,256,8], index: 3, kind: output, shape index: {0}]   ;;  %s4386_s4 = inlined_call_operand.hbm [shape: f32[2,2,8], index: 4, kind: output, shape index: {1}]  }
   0x1   :  { %12 = vsyncpa [#allocation3 + $0x1], 0  ;;  %s2526_s15 = smov 0   ;;  %s2528_s16 = smov 0  }
   0x2   :  { %s2530_s17 = smov 0   ;;  %s2532_s18 = smov 0  }
   0x3 LB: > { %s2547_s19 = sadd.s32 4294967295, %s2490_s18   ;;  %s2181_s20 = sadd.s32 4294967294, %s2490_s18   ;;  %s2490_s18 = sphi %s2532_s18, %s4636_s18   ;;  %s2486_s17 = sphi %s2530_s17, %s4635_s17   ;;  %s2482_s16 = sphi %s2528_s16, %s4634_s16   ;;  %s2478_s15 = sphi %s2526_s15, %s4633_s15  }
   0x4   : > { %s2551_s21 = sadd.s32 1, %s2490_s18   ;;  %s119_s22 = sadd.s32 1, %s2486_s17 }
   0x5   : > { %s116_s23 = ssub.s32 %s2490_s18, %s2551_s21  ;;  %p129_p0 = scmp.ne.s32.totalorder %s2486_s17, %s2482_s16 }
   0x6   : > { %p117_p1 = scmp.eq.s32.totalorder %s116_s23, 0  ;;  %p130_p2 = scmp.eq.s32.totalorder %s2547_s19, 1 }
   0x7   : > { %p135_p3 = scmp.ne.s32.totalorder %s2482_s16, %s2478_s15  ;;  %p136_p4 = scmp.eq.s32.totalorder %s2181_s20, 1 }
   0x8   : > { %s2562_s24 = scalar_select %p117_p1, %s2486_s17, %s119_s22  }
   0x9   : > { %p2564_p5 = por %p130_p2, %p129_p0  ;;  %p2568_p6 = por %p136_p4, %p135_p3 }
   0xa   : > { %p2184_p7 = scmp.ge.s32.totalorder %s2490_s18, 1  ;;  %p168_p8 = scmp.lt.s32.totalorder %s2490_s18, 3 }
   0xc   : > { %p169_p9 = pnand %p2184_p7, %p168_p8 }
   0xe   : > { %172 = sbr.rel (%p169_p9) target bundleno = 886 (0x376), region = 32 }
  0x13   : > { %p199_p10 = scmp.lt.s32.totalorder %s2547_s19, 1  ;;  %vm311_vm0 = vcmask 1046528   ;;  %s2492_s6 = smov 8   ;;  %vm488_vm1 = vcmask 1045504   ;;  %vm1267_vm2 = vcmask 64512   ;;  %vm1300_vm3 = vcmask 130048  }
  0x14   : > { %s2493_s7 = smov 16   ;;  %s2494_s8 = smov 24   ;;  %vm1333_vm4 = vcmask 195584   ;;  %vm1366_vm5 = vcmask 261120   ;;  %vm1399_vm6 = vcmask 326656   ;;  %vm1432_vm7 = vcmask 392192  }
  0x15   : > { %s2576_s27 = scalar_select %p199_p10, %s2547_s19, 1  ;;  %vm1465_vm8 = vcmask 457728   ;;  %vm1498_vm9 = vcmask 523264   ;;  %vm1547_vm10 = vcmask 588800   ;;  %vm2071_vm11 = vcmask 1040384  }
  0x16   : > { %s2495_s20 = smov 32   ;;  %s2496_s30 = smov 40   ;;  %vm2073_vm12 = vcmask 58368  }
  0x17   : > { %s2352_s28 = smul.u32 432, %s2576_s27  ;;  %s2497_s13 = smov 48  }
  0x18   : > { %s2498_s23 = smov 56   ;;  %s2223_s9 = sshll.u32 %s2547_s19, 5 }
  0x19   : > { %s2582_s5 = scalar_lea.vmem %s4382_s0, %s2352_s28  ;;  %s2499_s28 = smov 64  }
  0x1a   : > { %v2585_v0 = vld [vmem:[%s2582_s5 + $0x18] sm:$0xff]  ;;  %v2588_v1 = vld [vmem:[%s2582_s5 + $0x20] sm:$0xff]  ;;  %v2596_v5 = vld [vmem:[%s2582_s5 + $0x8] sm:$0xff]  ;;  %s4347_s14 = scalar_lea.hbm %s4386_s4, %s2223_s9  ;;  %s2500_s19 = smov [#allocation2]  }
  0x1b   : > { %v2591_v2 = vld [vmem:[%s2582_s5] sm:$0xff]  ;;  %v317_v3 = vrot.slane %v2585_v0, 1  ;;  %v318_v4 = vrot.slane %v2588_v1, 1  ;;  %4460 = vst [vmem:[#allocation6_spill] sm:$0xff] %v2596_v5  ;;  %v2600_v7 = vld [vmem:[%s2582_s5 + $0x28] sm:$0x3] }
  0x1c   : > { %4459 = vst [vmem:[#allocation5_spill] sm:$0xff] %v2591_v2  ;;  %v312_v6 = vrot.slane %v2591_v2, 1  ;;  %v313_v8 = vrot.slane %v2596_v5, 1  ;;  %v320_v9 = vrot.slane %v2600_v7, 1  ;;  %v2605_v10 = vld [vmem:[%s2582_s5 + $0x10] sm:$0x3] }
  0x1d   : > { %v2608_v11 = vld [vmem:[%s2582_s5 + $0x38] sm:$0xff]  ;;  %v2611_v12 = vsel %vm311_vm0, %v317_v3, %v318_v4  ;;  %v315_v13 = vrot.slane %v2605_v10, 1  ;;  %v2615_v14 = vld [vmem:[%s2582_s5 + $0x40] sm:$0x3]  ;;  %v2618_v15 = vld [vmem:[%s2582_s5 + $0x30] sm:$0xff] }
  0x1e   : > { %396 = vrot.lane.b32.xlu1 %v2611_v12, %s2492_s6  ;;  %v314_v16 = vsel %vm311_vm0, %v312_v6, %v313_v8  ;;  %v2625_v17 = vsel %vm311_vm0, %v318_v4, %v320_v9  ;;  %v323_v18 = vrot.slane %v2608_v11, 1  ;;  %v325_v19 = vrot.slane %v2615_v14, 1  ;;  %v2632_v22 = vld [vmem:[%s2582_s5 + $0x50] sm:$0xff]  ;;  %v2635_v23 = vld [vmem:[%s2582_s5 + $0x58] sm:$0x3]  ;;  %v2638_v24 = vld [vmem:[%s2582_s5 + $0x48] sm:$0xff] }
  0x1f   : > { %392 = vrot.lane.b32.xlu0 %v314_v16, %s2492_s6  ;;  %v316_v20 = vsel %vm311_vm0, %v313_v8, %v315_v13  ;;  %v322_v21 = vrot.slane %v2618_v15, 1  ;;  %v328_v26 = vrot.slane %v2632_v22, 1  ;;  %v330_v27 = vrot.slane %v2635_v23, 1  ;;  %v2653_v30 = vld [vmem:[%s2582_s5 + $0x68] sm:$0xff]  ;;  %v2656_v31 = vld [vmem:[%s2582_s5 + $0x70] sm:$0x3] }
  0x20   : > { %v2644_v25 = vsel %vm311_vm0, %v323_v18, %v325_v19  ;;  %v327_v29 = vrot.slane %v2638_v24, 1  ;;  %v2659_v32 = vld [vmem:[%s2582_s5 + $0x60] sm:$0xff]  ;;  %v333_v34 = vrot.slane %v2653_v30, 1  ;;  %v335_v35 = vrot.slane %v2656_v31, 1  ;;  %v2678_v39 = vld [vmem:[%s2582_s5 + $0x88] sm:$0x3] }
  0x21   : > { %v2649_v28 = vsel %vm311_vm0, %v322_v21, %v323_v18  ;;  %v2666_v33 = vsel %vm311_vm0, %v328_v26, %v330_v27  ;;  %v332_v37 = vrot.slane %v2659_v32, 1  ;;  %v2675_v38 = vld [vmem:[%s2582_s5 + $0x80] sm:$0xff]  ;;  %v2681_v40 = vld [vmem:[%s2582_s5 + $0x78] sm:$0xff]  ;;  %v340_v43 = vrot.slane %v2678_v39, 1  ;;  %v2703_v48 = vld [vmem:[%s2582_s5 + $0x90] sm:$0xff] }
  0x22   : > { %398 = vrot.lane.b32.xlu1 %v2625_v17, %s2492_s6  ;;  %4461 = vst [vmem:[#allocation7_spill] sm:$0xff] %v2666_v33  ;;  %v2671_v36 = vsel %vm311_vm0, %v327_v29, %v328_v26  ;;  %v2688_v41 = vsel %vm311_vm0, %v333_v34, %v335_v35  ;;  %v338_v42 = vrot.slane %v2675_v38, 1  ;;  %v337_v45 = vrot.slane %v2681_v40, 1  ;;  %v2697_v46 = vld [vmem:[%s2582_s5 + $0x98] sm:$0xff]  ;;  %v2700_v47 = vld [vmem:[%s2582_s5 + $0xa0] sm:$0x3] }
  0x23   : > { %394 = vrot.lane.b32.xlu0 %v316_v20, %s2492_s6  ;;  %4462 = vst [vmem:[#allocation8_spill] sm:$0xff] %v2688_v41  ;;  %v2693_v44 = vsel %vm311_vm0, %v332_v37, %v333_v34  ;;  %v343_v50 = vrot.slane %v2697_v46, 1  ;;  %v345_v51 = vrot.slane %v2700_v47, 1  ;;  %v342_v53 = vrot.slane %v2703_v48, 1  ;;  %v2719_v54 = vld [vmem:[%s2582_s5 + $0xb0] sm:$0xff]  ;;  %v2725_v56 = vld [vmem:[%s2582_s5 + $0xa8] sm:$0xff] }
  0x24   : > { %4463 = vst [vmem:[#allocation9_spill] sm:$0xff] %v2693_v44  ;;  %v2710_v49 = vsel %vm311_vm0, %v338_v42, %v340_v43  ;;  %v2715_v52 = vsel %vm311_vm0, %v337_v45, %v338_v42  ;;  %v2722_v55 = vld [vmem:[%s2582_s5 + $0xb8] sm:$0x3]  ;;  %v348_v58 = vrot.slane %v2719_v54, 1  ;;  %v347_v61 = vrot.slane %v2725_v56, 1  ;;  %v2741_v62 = vld [vmem:[%s2582_s5 + $0xc8] sm:$0xff] }
  0x25   : > { %4464 = vst [vmem:[#allocation10_spill] sm:$0xff] %v2710_v49  ;;  %4465 = vst [vmem:[#allocation11_spill] sm:$0xff] %v2715_v52  ;;  %v2732_v57 = vsel %vm311_vm0, %v343_v50, %v345_v51  ;;  %v350_v59 = vrot.slane %v2722_v55, 1  ;;  %v2737_v60 = vsel %vm311_vm0, %v342_v53, %v343_v50  ;;  %v2744_v63 = vld [vmem:[%s2582_s5 + $0xd0] sm:$0x3]  ;;  %v2747_v3 = vld [vmem:[%s2582_s5 + $0xc0] sm:$0xff] }
  0x26   : > { %402 = vrot.lane.b32.xlu1 %v2644_v25, %s2492_s6  ;;  %4466 = vst [vmem:[#allocation12_spill] sm:$0xff] %v2732_v57  ;;  %4467 = vst [vmem:[#allocation13_spill] sm:$0xff] %v2737_v60  ;;  %v353_v6 = vrot.slane %v2741_v62, 1  ;;  %v355_v8 = vrot.slane %v2744_v63, 1  ;;  %v2759_v9 = vsel %vm311_vm0, %v347_v61, %v348_v58  ;;  %v352_v13 = vrot.slane %v2747_v3, 1  ;;  %v2763_v16 = vld [vmem:[%s2582_s5 + $0xe0] sm:$0xff] }
  0x27   : > { %400 = vrot.lane.b32.xlu0 %v2649_v28, %s2492_s6  ;;  %v2754_v4 = vsel %vm311_vm0, %v348_v58, %v350_v59  ;;  %4469 = vst [vmem:[#allocation15_spill] sm:$0xff] %v2759_v9  ;;  %v2766_v18 = vld [vmem:[%s2582_s5 + $0xe8] sm:$0x3]  ;;  %v2769_v19 = vld [vmem:[%s2582_s5 + $0xd8] sm:$0xff]  ;;  %v358_v21 = vrot.slane %v2763_v16, 1  ;;  %v2791_v37 = vld [vmem:[%s2582_s5 + $0xf0] sm:$0xff] }
  0x28   : > { %4468 = vst [vmem:[#allocation14_spill] sm:$0xff] %v2754_v4  ;;  %v2776_v20 = vsel %vm311_vm0, %v353_v6, %v355_v8  ;;  %v360_v26 = vrot.slane %v2766_v18, 1  ;;  %v2781_v27 = vsel %vm311_vm0, %v352_v13, %v353_v6  ;;  %v357_v29 = vrot.slane %v2769_v19, 1  ;;  %v2785_v34 = vld [vmem:[%s2582_s5 + $0xf8] sm:$0xff]  ;;  %v2788_v35 = vld [vmem:[%s2582_s5 + $0x100] sm:$0x3] }
  0x29   : > { %4470 = vst [vmem:[#allocation16_spill] sm:$0xff] %v2776_v20  ;;  %4471 = vst [vmem:[#allocation17_spill] sm:$0xff] %v2781_v27  ;;  %v363_v43 = vrot.slane %v2785_v34, 1  ;;  %v365_v45 = vrot.slane %v2788_v35, 1  ;;  %v362_v51 = vrot.slane %v2791_v37, 1  ;;  %v2807_v53 = vld [vmem:[%s2582_s5 + $0x110] sm:$0xff] }
  0x2a   : > { %406 = vrot.lane.b32.xlu1 %v2666_v33, %s2492_s6  ;;  %v2798_v42 = vsel %vm311_vm0, %v358_v21, %v360_v26  ;;  %v2803_v50 = vsel %vm311_vm0, %v357_v29, %v358_v21  ;;  %v2810_v58 = vld [vmem:[%s2582_s5 + $0x118] sm:$0x3]  ;;  %v2813_v59 = vld [vmem:[%s2582_s5 + $0x108] sm:$0xff]  ;;  %v368_v6 = vrot.slane %v2807_v53, 1  ;;  %v2832_v29 = vld [vmem:[%s2582_s5 + $0x130] sm:$0x3] }
  0x2b   : > { %404 = vrot.lane.b32.xlu0 %v2671_v36, %s2492_s6  ;;  %4472 = vst [vmem:[#allocation18_spill] sm:$0xff] %v2798_v42  ;;  %4473 = vst [vmem:[#allocation19_spill] sm:$0xff] %v2803_v50  ;;  %v2820_v61 = vsel %vm311_vm0, %v363_v43, %v365_v45  ;;  %v370_v8 = vrot.slane %v2810_v58, 1  ;;  %v2825_v13 = vsel %vm311_vm0, %v362_v51, %v363_v43  ;;  %v367_v21 = vrot.slane %v2813_v59, 1  ;;  %v2829_v26 = vld [vmem:[%s2582_s5 + $0x128] sm:$0xff] }
  0x2c   : > { %4474 = vst [vmem:[#allocation20_spill] sm:$0xff] %v2820_v61  ;;  %4475 = vst [vmem:[#allocation21_spill] sm:$0xff] %v2825_v13  ;;  %v373_v43 = vrot.slane %v2829_v26, 1  ;;  %v375_v51 = vrot.slane %v2832_v29, 1 }
  0x2d   : > { %v2842_v45 = vsel %vm311_vm0, %v368_v6, %v370_v8 }
  0x2e   : > { %410 = vrot.lane.b32.xlu1 %v2688_v41, %s2492_s6  ;;  %4476 = vst [vmem:[#allocation22_spill] sm:$0xff] %v2842_v45  ;;  %v2864_v8 = vsel %vm311_vm0, %v373_v43, %v375_v51  ;;  %v2898_v41 = vld [vmem:[%s2582_s5 + $0x178] sm:$0x3] }
  0x2f   : > { %408 = vrot.lane.b32.xlu0 %v2693_v44, %s2492_s6  ;;  %4478 = vst [vmem:[#allocation24_spill] sm:$0xff] %v2864_v8 }
  0x32   : > { %414 = vrot.lane.b32.xlu1 %v2710_v49, %s2492_s6 }
  0x33   : > { %412 = vrot.lane.b32.xlu0 %v2715_v52, %s2492_s6  ;;  %v2895_v52 = vld [vmem:[%s2582_s5 + $0x170] sm:$0xff] }
  0x36   : > { %418 = vrot.lane.b32.xlu1 %v2732_v57, %s2492_s6  ;;  %v2873_v57 = vld [vmem:[%s2582_s5 + $0x158] sm:$0xff] }
  0x37   : > { %416 = vrot.lane.b32.xlu0 %v2737_v60, %s2492_s6 }
  0x3a   : > { %422 = vrot.lane.b32.xlu1 %v2754_v4, %s2492_s6 }
  0x3b   : > { %420 = vrot.lane.b32.xlu0 %v2759_v9, %s2492_s6 }
  0x3e   : > { %426 = vrot.lane.b32.xlu1 %v2776_v20, %s2492_s6 }
  0x3f   : > { %424 = vrot.lane.b32.xlu0 %v2781_v27, %s2492_s6  ;;  %v2851_v27 = vld [vmem:[%s2582_s5 + $0x140] sm:$0xff] }
  0x42   : > { %430 = vrot.lane.b32.xlu1 %v2798_v42, %s2492_s6  ;;  %v2835_v42 = vld [vmem:[%s2582_s5 + $0x120] sm:$0xff] }
  0x43   : > { %428 = vrot.lane.b32.xlu0 %v2803_v50, %s2492_s6  ;;  %v2847_v50 = vsel %vm311_vm0, %v367_v21, %v368_v6  ;;  %v372_v20 = vrot.slane %v2835_v42, 1  ;;  %v378_v6 = vrot.slane %v2851_v27, 1 }
  0x44   : > { %4477 = vst [vmem:[#allocation23_spill] sm:$0xff] %v2847_v50 }
  0x45   : > { %v2869_v4 = vsel %vm311_vm0, %v372_v20, %v373_v43  ;;  %v383_v20 = vrot.slane %v2873_v57, 1 }
  0x46   : > { %434 = vrot.lane.b32.xlu1 %v2820_v61, %s2492_s6  ;;  %v2854_v61 = vld [vmem:[%s2582_s5 + $0x148] sm:$0x3]  ;;  %4479 = vst [vmem:[#allocation25_spill] sm:$0xff] %v2869_v4 }
  0x47   : > { %432 = vrot.lane.b32.xlu0 %v2825_v13, %s2492_s6  ;;  %v2857_v13 = vld [vmem:[%s2582_s5 + $0x138] sm:$0xff]  ;;  %v380_v21 = vrot.slane %v2854_v61, 1 }
  0x48   : > { %v377_v9 = vrot.slane %v2857_v13, 1 }
  0x49   : > { %v2886_v51 = vsel %vm311_vm0, %v378_v6, %v380_v21 }
  0x4a   : > { %438 = vrot.lane.b32.xlu1 %v2842_v45, %s2492_s6  ;;  %v2876_v45 = vld [vmem:[%s2582_s5 + $0x160] sm:$0x3]  ;;  %4480 = vst [vmem:[#allocation26_spill] sm:$0xff] %v2886_v51  ;;  %v2891_v60 = vsel %vm311_vm0, %v377_v9, %v378_v6  ;;  %v388_v9 = vrot.slane %v2895_v52, 1  ;;  %v390_v6 = vrot.slane %v2898_v41, 1 }
  0x4b   : > { %436 = vrot.lane.b32.xlu0 %v2847_v50, %s2492_s6  ;;  %v2879_v50 = vld [vmem:[%s2582_s5 + $0x150] sm:$0xff]  ;;  %v385_v43 = vrot.slane %v2876_v45, 1  ;;  %4481 = vst [vmem:[#allocation27_spill] sm:$0xff] %v2891_v60 }
  0x4c   : > { %v382_v49 = vrot.slane %v2879_v50, 1 }
  0x4d   : > { %v2908_v21 = vsel %vm311_vm0, %v383_v20, %v385_v43  ;;  %v490_v43 = vrot.slane %v2596_v5, 2  ;;  %v527_v5 = vrot.slane %v2722_v55, 2 }
  0x4e   : > { %442 = vrot.lane.b32.xlu1 %v2864_v8, %s2492_s6  ;;  %v2901_v8 = vld [vmem:[%s2582_s5 + $0x168] sm:$0xff]  ;;  %4482 = vst [vmem:[#allocation28_spill] sm:$0xff] %v2908_v21 }
  0x4f   : > { %440 = vrot.lane.b32.xlu0 %v2869_v4, %s2492_s6  ;;  %v2913_v4 = vsel %vm311_vm0, %v382_v49, %v383_v20  ;;  %v387_v44 = vrot.slane %v2901_v8, 1  ;;  %v489_v49 = vrot.slane %v2591_v2, 2  ;;  %v532_v2 = vrot.slane %v2744_v63, 2 }
  0x50   : > { %4483 = vst [vmem:[#allocation29_spill] sm:$0xff] %v2913_v4 }
  0x51   : > { %v2926_v33 = vsel %vm311_vm0, %v387_v44, %v388_v9  ;;  %v494_v44 = vrot.slane %v2585_v0, 2 }
  0x52   : > { %446 = vrot.lane.b32.xlu1 %v2886_v51, %s2492_s6  ;;  %v2921_v51 = vsel %vm311_vm0, %v388_v9, %v390_v6  ;;  %4485 = vst [vmem:[#allocation31_spill] sm:$0xff] %v2926_v33  ;;  %v495_v6 = vrot.slane %v2588_v1, 2 }
  0x53   : > { %444 = vrot.lane.b32.xlu0 %v2891_v60, %s2492_s6  ;;  %4484 = vst [vmem:[#allocation30_spill] sm:$0xff] %v2921_v51  ;;  %v492_v60 = vrot.slane %v2605_v10, 2  ;;  %v491_v10 = vsel %vm488_vm1, %v489_v49, %v490_v43  ;;  %v507_v49 = vrot.slane %v2635_v23, 2 }
  0x55   : > { %v493_v20 = vsel %vm488_vm1, %v490_v43, %v492_v60  ;;  %v502_v60 = vrot.slane %v2615_v14, 2 }
  0x56   : > { %450 = vrot.lane.b32.xlu1 %v2908_v21, %s2492_s6  ;;  %v497_v21 = vrot.slane %v2600_v7, 2  ;;  %v499_v7 = vrot.slane %v2618_v15, 2 }
  0x57   : > { %448 = vrot.lane.b32.xlu0 %v2913_v4, %s2492_s6  ;;  %v522_v4 = vrot.slane %v2700_v47, 2 }
  0x58   : > { %v2941_v9 = vsel %vm488_vm1, %v495_v6, %v497_v21  ;;  %v505_v21 = vrot.slane %v2632_v22, 2 }
  0x5a   : > { %454 = vrot.lane.b32.xlu1 %v2921_v51, %s2492_s6  ;;  %v500_v51 = vrot.slane %v2608_v11, 2 }
  0x5b   : > { %452 = vrot.lane.b32.xlu0 %v2926_v33, %s2492_s6  ;;  %v2946_v33 = vsel %vm488_vm1, %v494_v44, %v495_v6  ;;  %v2967_v6 = vsel %vm488_vm1, %v505_v21, %v507_v49  ;;  %v512_v44 = vrot.slane %v2656_v31, 2  ;;  %v517_v49 = vrot.slane %v2678_v39, 2 }
  0x5c   : > { %v2954_v43 = vsel %vm488_vm1, %v500_v51, %v502_v60  ;;  %v2959_v14 = vsel %vm488_vm1, %v499_v7, %v500_v51  ;;  %v509_v51 = vrot.slane %v2659_v32, 2  ;;  %v515_v7 = vrot.slane %v2675_v38, 2 }
  0x5e   : > { %571 = vrot.lane.b32.xlu1 %v493_v20, %s2493_s7  ;;  %v504_v20 = vrot.slane %v2638_v24, 2 }
  0x5f   : > { %569 = vrot.lane.b32.xlu0 %v491_v10, %s2493_s7  ;;  %v510_v10 = vrot.slane %v2653_v30, 2 }
  0x60   : > { %v2972_v23 = vsel %vm488_vm1, %v504_v20, %v505_v21  ;;  %v514_v21 = vrot.slane %v2681_v40, 2  ;;  %v2993_v20 = vsel %vm488_vm1, %v515_v7, %v517_v49  ;;  %v525_v49 = vrot.slane %v2719_v54, 2 }
  0x61   : > { %v2980_v60 = vsel %vm488_vm1, %v510_v10, %v512_v44  ;;  %v2985_v31 = vsel %vm488_vm1, %v509_v51, %v510_v10  ;;  %v520_v44 = vrot.slane %v2697_v46, 2  ;;  %v519_v10 = vrot.slane %v2703_v48, 2 }
  0x62   : > { %575 = vrot.lane.b32.xlu1 %v2941_v9, %s2493_s7  ;;  %v2998_v39 = vsel %vm488_vm1, %v514_v21, %v515_v7  ;;  %v524_v7 = vrot.slane %v2725_v56, 2  ;;  %v3019_v21 = vsel %vm488_vm1, %v525_v49, %v527_v5  ;;  %v535_v5 = vrot.slane %v2763_v16, 2 }
  0x63   : > { %573 = vrot.lane.b32.xlu0 %v2946_v33, %s2493_s7  ;;  %v3006_v51 = vsel %vm488_vm1, %v520_v44, %v522_v4  ;;  %v3011_v47 = vsel %vm488_vm1, %v519_v10, %v520_v44  ;;  %4487 = vst [vmem:[#allocation33_spill] sm:$0xff] %v3019_v21  ;;  %v530_v4 = vrot.slane %v2741_v62, 2  ;;  %v529_v44 = vrot.slane %v2747_v3, 2 }
  0x64   : > { %4486 = vst [vmem:[#allocation32_spill] sm:$0xff] %v3006_v51  ;;  %v3024_v55 = vsel %vm488_vm1, %v524_v7, %v525_v49  ;;  %v534_v49 = vrot.slane %v2769_v19, 2 }
  0x65   : > { %v3032_v10 = vsel %vm488_vm1, %v530_v4, %v532_v2  ;;  %v3037_v63 = vsel %vm488_vm1, %v529_v44, %v530_v4  ;;  %v540_v2 = vrot.slane %v2785_v34, 2  ;;  %v539_v4 = vrot.slane %v2791_v37, 2 }
  0x66   : > { %579 = vrot.lane.b32.xlu1 %v2954_v43, %s2493_s7  ;;  %4488 = vst [vmem:[#allocation34_spill] sm:$0xff] %v3032_v10 }
  0x67   : > { %577 = vrot.lane.b32.xlu0 %v2959_v14, %s2493_s7 }
  0x6a   : > { %583 = vrot.lane.b32.xlu1 %v2967_v6, %s2493_s7 }
  0x6b   : > { %581 = vrot.lane.b32.xlu0 %v2972_v23, %s2493_s7 }
  0x6e   : > { %587 = vrot.lane.b32.xlu1 %v2980_v60, %s2493_s7 }
  0x6f   : > { %585 = vrot.lane.b32.xlu0 %v2985_v31, %s2493_s7 }
  0x72   : > { %591 = vrot.lane.b32.xlu1 %v2993_v20, %s2493_s7 }
  0x73   : > { %589 = vrot.lane.b32.xlu0 %v2998_v39, %s2493_s7 }
  0x76   : > { %595 = vrot.lane.b32.xlu1 %v3006_v51, %s2493_s7  ;;  %v537_v51 = vrot.slane %v2766_v18, 2  ;;  %v3050_v18 = vsel %vm488_vm1, %v534_v49, %v535_v5 }
  0x77   : > { %593 = vrot.lane.b32.xlu0 %v3011_v47, %s2493_s7 }
  0x78   : > { %v3045_v7 = vsel %vm488_vm1, %v535_v5, %v537_v51  ;;  %v545_v51 = vrot.slane %v2807_v53, 2  ;;  %v544_v5 = vrot.slane %v2813_v59, 2  ;;  %v552_v53 = vrot.slane %v2832_v29, 2 }
  0x7a   : > { %599 = vrot.lane.b32.xlu1 %v3019_v21, %s2493_s7  ;;  %v542_v21 = vrot.slane %v2788_v35, 2  ;;  %v3063_v35 = vsel %vm488_vm1, %v539_v4, %v540_v2 }
  0x7b   : > { %597 = vrot.lane.b32.xlu0 %v3024_v55, %s2493_s7 }
  0x7c   : > { %v3058_v44 = vsel %vm488_vm1, %v540_v2, %v542_v21  ;;  %v550_v21 = vrot.slane %v2829_v26, 2  ;;  %v549_v2 = vrot.slane %v2835_v42, 2  ;;  %v557_v26 = vrot.slane %v2854_v61, 2 }
  0x7e   : > { %603 = vrot.lane.b32.xlu1 %v3032_v10, %s2493_s7  ;;  %v547_v10 = vrot.slane %v2810_v58, 2  ;;  %v3076_v58 = vsel %vm488_vm1, %v544_v5, %v545_v51  ;;  %v3084_v4 = vsel %vm488_vm1, %v550_v21, %v552_v53  ;;  %v3089_v29 = vsel %vm488_vm1, %v549_v2, %v550_v21 }
  0x7f   : > { %601 = vrot.lane.b32.xlu0 %v3037_v63, %s2493_s7  ;;  %v560_v5 = vrot.slane %v2873_v57, 2  ;;  %v565_v57 = vrot.slane %v2895_v52, 2 }
  0x80   : > { %v3071_v49 = vsel %vm488_vm1, %v545_v51, %v547_v10  ;;  %v555_v10 = vrot.slane %v2851_v27, 2  ;;  %v554_v51 = vrot.slane %v2857_v13, 2  ;;  %v562_v27 = vrot.slane %v2876_v45, 2 }
  0x81   : > { %v559_v13 = vrot.slane %v2879_v50, 2  ;;  %v567_v45 = vrot.slane %v2898_v41, 2  ;;  %v564_v50 = vrot.slane %v2901_v8, 2 }
  0x82   : > { %607 = vrot.lane.b32.xlu1 %v3045_v7, %s2493_s7  ;;  %v3097_v42 = vsel %vm488_vm1, %v555_v10, %v557_v26  ;;  %v3104_v61 = vsel %vm488_vm1, %v554_v51, %v555_v10  ;;  %v3114_v2 = vsel %vm488_vm1, %v560_v5, %v562_v27 }
  0x83   : > { %605 = vrot.lane.b32.xlu0 %v3050_v18, %s2493_s7  ;;  %4489 = vst [vmem:[#allocation35_spill] sm:$0xff] %v3097_v42  ;;  %4490 = vst [vmem:[#allocation36_spill] sm:$0xff] %v3104_v61  ;;  %v3121_v10 = vsel %vm488_vm1, %v559_v13, %v560_v5  ;;  %v3131_v27 = vsel %vm488_vm1, %v565_v57, %v567_v45  ;;  %v3136_v41 = vsel %vm488_vm1, %v564_v50, %v565_v57 }
  0x84   : > { %4491 = vst [vmem:[#allocation37_spill] sm:$0xff] %v3114_v2  ;;  %4492 = vst [vmem:[#allocation38_spill] sm:$0xff] %v3121_v10 }
  0x85   : > { %4493 = vst [vmem:[#allocation39_spill] sm:$0xff] %v3131_v27  ;;  %4494 = vst [vmem:[#allocation40_spill] sm:$0xff] %v3136_v41 }
  0x86   : > { %611 = vrot.lane.b32.xlu1 %v3058_v44, %s2493_s7 }
  0x87   : > { %609 = vrot.lane.b32.xlu0 %v3063_v35, %s2493_s7 }
  0x8a   : > { %615 = vrot.lane.b32.xlu1 %v3071_v49, %s2493_s7 }
  0x8b   : > { %613 = vrot.lane.b32.xlu0 %v3076_v58, %s2493_s7 }
  0x8e   : > { %619 = vrot.lane.b32.xlu1 %v3084_v4, %s2493_s7 }
  0x8f   : > { %617 = vrot.lane.b32.xlu0 %v3089_v29, %s2493_s7 }
  0x90   : > { %v3101_v53 = vpop.permute.xlu1 %396 }
  0x91   : > { %v3107_v21 = vpop.permute.xlu0 %392 }
  0x92   : > { %623 = vrot.lane.b32.xlu1 %v3097_v42, %s2493_s7 }
  0x93   : > { %621 = vrot.lane.b32.xlu0 %v3104_v61, %s2493_s7 }
  0x94   : > { %v3118_v26 = vpop.permute.xlu1 %398 }
  0x95   : > { %v3124_v51 = vpop.permute.xlu0 %394 }
  0x96   : > { %627 = vrot.lane.b32.xlu1 %v3114_v2, %s2493_s7 }
  0x97   : > { %625 = vrot.lane.b32.xlu0 %v3121_v10, %s2493_s7 }
  0x98   : > { %v3133_v52 = vpop.permute.xlu1 %402 }
  0x99   : > { %v3138_v5 = vpop.permute.xlu0 %400 }
  0x9a   : > { %631 = vrot.lane.b32.xlu1 %v3131_v27, %s2493_s7 }
  0x9b   : > { %629 = vrot.lane.b32.xlu0 %v3136_v41, %s2493_s7 }
  0x9c   : > { %v3144_v8 = vpop.permute.xlu1 %406 }
  0x9d   : > { %v3146_v13 = vpop.permute.xlu0 %404 }
  0x9e   : > { %669 = vrot.lane.b32.xlu1 %v2588_v1, %s2494_s8 }
  0x9f   : > { %667 = vrot.lane.b32.xlu0 %v2585_v0, %s2494_s8 }
  0xa0   : > { %v3152_v57 = vpop.permute.xlu1 %410 }
  0xa1   : > { %v3154_v45 = vpop.permute.xlu0 %408 }
  0xa2   : > { %673 = vrot.lane.b32.xlu1 %v2608_v11, %s2494_s8 }
  0xa3   : > { %671 = vrot.lane.b32.xlu0 %v2618_v15, %s2494_s8 }
  0xa4   : > { %v3160_v50 = vpop.permute.xlu1 %414 }
  0xa5   : > { %v3162_v27 = vpop.permute.xlu0 %412 }
  0xa6   : > { %677 = vrot.lane.b32.xlu1 %v2632_v22, %s2494_s8 }
  0xa7   : > { %675 = vrot.lane.b32.xlu0 %v2638_v24, %s2494_s8 }
  0xa8   : > { %v3168_v0 = vpop.permute.xlu1 %418 }
  0xa9   : > { %4495 = vst [vmem:[#allocation41_spill] sm:$0xff] %v3168_v0  ;;  %v3170_v1 = vpop.permute.xlu0 %416 }
  0xaa   : > { %4496 = vst [vmem:[#allocation42_spill] sm:$0xff] %v3170_v1  ;;  %681 = vrot.lane.b32.xlu1 %v2653_v30, %s2494_s8 }
  0xab   : > { %679 = vrot.lane.b32.xlu0 %v2659_v32, %s2494_s8 }
  0xac   : > { %v3176_v41 = vpop.permute.xlu1 %422 }
  0xad   : > { %4497 = vst [vmem:[#allocation43_spill] sm:$0xff] %v3176_v41  ;;  %v3178_v2 = vpop.permute.xlu0 %420 }
  0xae   : > { %4498 = vst [vmem:[#allocation44_spill] sm:$0xff] %v3178_v2  ;;  %685 = vrot.lane.b32.xlu1 %v2675_v38, %s2494_s8 }
  0xaf   : > { %683 = vrot.lane.b32.xlu0 %v2681_v40, %s2494_s8 }
  0xb0   : > { %v3184_v10 = vpop.permute.xlu1 %426 }
  0xb1   : > { %4499 = vst [vmem:[#allocation45_spill] sm:$0xff] %v3184_v10  ;;  %v3186_v42 = vpop.permute.xlu0 %424 }
  0xb2   : > { %4500 = vst [vmem:[#allocation46_spill] sm:$0xff] %v3186_v42  ;;  %689 = vrot.lane.b32.xlu1 %v2697_v46, %s2494_s8 }
  0xb3   : > { %687 = vrot.lane.b32.xlu0 %v2703_v48, %s2494_s8 }
  0xb4   : > { %v3192_v0 = vpop.permute.xlu1 %430 }
  0xb5   : > { %4501 = vst [vmem:[#allocation47_spill] sm:$0xff] %v3192_v0  ;;  %v3194_v41 = vpop.permute.xlu0 %428 }
  0xb6   : > { %4502 = vst [vmem:[#allocation48_spill] sm:$0xff] %v3194_v41  ;;  %693 = vrot.lane.b32.xlu1 %v2719_v54, %s2494_s8 }
  0xb7   : > { %691 = vrot.lane.b32.xlu0 %v2725_v56, %s2494_s8 }
  0xb8   : > { %v3200_v2 = vpop.permute.xlu1 %434 }
  0xb9   : > { %4503 = vst [vmem:[#allocation49_spill] sm:$0xff] %v3200_v2  ;;  %v3202_v10 = vpop.permute.xlu0 %432  ;;  %v1539_v2 = vld [vmem:[%s4383_s1 + $0x40] sm:$0xff] }
  0xba   : > { %4504 = vst [vmem:[#allocation50_spill] sm:$0xff] %v3202_v10  ;;  %697 = vrot.lane.b32.xlu1 %v2741_v62, %s2494_s8  ;;  %2268 = vmatprep.subr.mxu0 %v1539_v2 }
  0xbb   : > { %695 = vrot.lane.b32.xlu0 %v2747_v3, %s2494_s8  ;;  %2334 = vmatprep.subr.mxu1 %v1539_v2 }
  0xbc   : > { %v3208_v42 = vpop.permute.xlu1 %438  ;;  %2269 = vmatpush3.msra.mxu0 %v1539_v2  ;;  %2343 = vmatpush3.msra.mxu1 %v1539_v2 }
  0xbd   : > { %4505 = vst [vmem:[#allocation51_spill] sm:$0xff] %v3208_v42  ;;  %v3210_v0 = vpop.permute.xlu0 %436  ;;  %v1538_v42 = vld [vmem:[%s4383_s1 + $0x38] sm:$0xff] }
  0xbe   : > { %4506 = vst [vmem:[#allocation52_spill] sm:$0xff] %v3210_v0  ;;  %701 = vrot.lane.b32.xlu1 %v2763_v16, %s2494_s8  ;;  %2270 = vmatprep.subr.mxu0 %v1538_v42 }
  0xbf   : > { %699 = vrot.lane.b32.xlu0 %v2769_v19, %s2494_s8  ;;  %2271 = vmatpush3.msra.mxu0 %v1538_v42 }
  0xc0   : > { %v3219_v10 = vpop.permute.xlu1 %442  ;;  %2335 = vmatprep.subr.mxu1 %v1538_v42 }
  0xc1   : > { %4507 = vst [vmem:[#allocation53_spill] sm:$0xff] %v3219_v10  ;;  %v3221_v41 = vpop.permute.xlu0 %440  ;;  %v1537_v10 = vld [vmem:[%s4383_s1 + $0x30] sm:$0xff]  ;;  %2344 = vmatpush3.msra.mxu1 %v1538_v42 }
  0xc2   : > { %4508 = vst [vmem:[#allocation54_spill] sm:$0xff] %v3221_v41  ;;  %705 = vrot.lane.b32.xlu1 %v2785_v34, %s2494_s8  ;;  %2272 = vmatprep.subr.mxu0 %v1537_v10  ;;  %v1536_v41 = vld [vmem:[%s4383_s1 + $0x28] sm:$0xff] }
  0xc3   : > { %703 = vrot.lane.b32.xlu0 %v2791_v37, %s2494_s8  ;;  %2273 = vmatpush3.msra.mxu0 %v1537_v10 }
  0xc4   : > { %v3233_v0 = vpop.permute.xlu1 %446  ;;  %2274 = vmatprep.subr.mxu0 %v1536_v41  ;;  %2336 = vmatprep.subr.mxu1 %v1537_v10 }
  0xc5   : > { %4509 = vst [vmem:[#allocation55_spill] sm:$0xff] %v3233_v0  ;;  %v3235_v2 = vpop.permute.xlu0 %444  ;;  %v1535_v0 = vld [vmem:[%s4383_s1 + $0x20] sm:$0xff]  ;;  %2275 = vmatpush3.msra.mxu0 %v1536_v41  ;;  %2345 = vmatpush3.msra.mxu1 %v1537_v10 }
  0xc6   : > { %4510 = vst [vmem:[#allocation56_spill] sm:$0xff] %v3235_v2  ;;  %769 = vrot.lane.b32.xlu1 %v2611_v12, %s2495_s20  ;;  %2276 = vmatprep.subr.mxu0 %v1535_v0  ;;  %v1534_v12 = vld [vmem:[%s4383_s1 + $0x18] sm:$0xff] }
  0xc7   : > { %707 = vrot.lane.b32.xlu0 %v2813_v59, %s2494_s8  ;;  %2277 = vmatpush3.msra.mxu0 %v1535_v0  ;;  %v1533_v59 = vld [vmem:[%s4383_s1 + $0x10] sm:$0xff] }
  0xc8   : > { %v3247_v2 = vpop.permute.xlu1 %450  ;;  %2278 = vmatprep.subr.mxu0 %v1534_v12  ;;  %2337 = vmatprep.subr.mxu1 %v1536_v41 }
  0xc9   : > { %4511 = vst [vmem:[#allocation57_spill] sm:$0xff] %v3247_v2  ;;  %v3249_v42 = vpop.permute.xlu0 %448  ;;  %2279 = vmatpush3.msra.mxu0 %v1534_v12  ;;  %2346 = vmatpush3.msra.mxu1 %v1536_v41 }
  0xca   : > { %4512 = vst [vmem:[#allocation58_spill] sm:$0xff] %v3249_v42  ;;  %870 = vrot.lane.b32.xlu1 %v2946_v33, %s2496_s30  ;;  %2280 = vmatprep.subr.mxu0 %v1533_v59  ;;  %v1532_v33 = vld [vmem:[%s4383_s1 + $0x8] sm:$0xff]  ;;  %v4518_v42 = vld [vmem:[#allocation7_spill] sm:$0xff] }
  0xcb   : > { %771 = vrot.lane.b32.xlu0 %v2625_v17, %s2495_s20  ;;  %2281 = vmatpush3.msra.mxu0 %v1533_v59  ;;  %v1531_v17 = vld [vmem:[%s4383_s1] sm:$0xff] }
  0xcc   : > { %v3261_v2 = vpop.permute.xlu1 %454  ;;  %2282 = vmatprep.subr.mxu0 %v1532_v33  ;;  %2338 = vmatprep.subr.mxu1 %v1535_v0 }
  0xcd   : > { %4513 = vst [vmem:[#allocation59_spill] sm:$0xff] %v3261_v2  ;;  %v3263_v10 = vpop.permute.xlu0 %452  ;;  %2283 = vmatpush3.msra.mxu0 %v1532_v33  ;;  %2347 = vmatpush3.msra.mxu1 %v1535_v0 }
  0xce   : > { %4514 = vst [vmem:[#allocation60_spill] sm:$0xff] %v3263_v10  ;;  %968 = vrot.lane.b32.xlu1 %v2618_v15, %s2497_s13  ;;  %2284 = vmatprep.subr.mxu0 %v1531_v17 }
  0xcf   : > { %872 = vrot.lane.b32.xlu0 %v2941_v9, %s2496_s30  ;;  %2285 = vmatpush3.msra.mxu0 %v1531_v17 }
  0xd0   : > { %v3275_v10 = vpop.permute.xlu1 %571  ;;  %2339 = vmatprep.subr.mxu1 %v1534_v12 }
  0xd1   : > { %v3277_v2 = vpop.permute.xlu0 %569  ;;  %2348 = vmatpush3.msra.mxu1 %v1534_v12 }
  0xd2   : > { %1070 = vrot.lane.b32.xlu1 %v2649_v28, %s2498_s23  ;;  %2340 = vmatprep.subr.mxu1 %v1533_v59 }
  0xd3   : > { %970 = vrot.lane.b32.xlu0 %v2608_v11, %s2497_s13  ;;  %2349 = vmatpush3.msra.mxu1 %v1533_v59 }
  0xd4   : > { %v3283_v15 = vpop.permute.xlu1 %575  ;;  %2341 = vmatprep.subr.mxu1 %v1532_v33 }
  0xd5   : > { %v3285_v9 = vpop.permute.xlu0 %573  ;;  %2350 = vmatpush3.msra.mxu1 %v1532_v33 }
  0xd6   : > { %1072 = vrot.lane.b32.xlu1 %v2644_v25, %s2498_s23  ;;  %2342 = vmatprep.subr.mxu1 %v1531_v17 }
  0xd7   : > { %773 = vrot.lane.b32.xlu0 %v2649_v28, %s2495_s20  ;;  %2351 = vmatpush3.msra.mxu1 %v1531_v17 }
  0xd8   : > { %v3291_v41 = vpop.permute.xlu1 %579 }
  0xd9   : > { %v3293_v0 = vpop.permute.xlu0 %577 }
  0xda   : > { %775 = vrot.lane.b32.xlu1 %v2644_v25, %s2495_s20 }
  0xdb   : > { %1171 = vrot.lane.b32.xlu0 %v2959_v14, %s2499_s28 }
  0xdc   : > { %v3299_v11 = vpop.permute.xlu1 %583 }
  0xdd   : > { %v3301_v12 = vpop.permute.xlu0 %581 }
  0xde   : > { %1173 = vrot.lane.b32.xlu1 %v2954_v43, %s2499_s28 }
  0xdf   : > { %874 = vrot.lane.b32.xlu0 %v2959_v14, %s2496_s30 }
  0xe0   : > { %v3307_v28 = vpop.permute.xlu1 %587 }
  0xe1   : > { %v3309_v59 = vpop.permute.xlu0 %585 }
  0xe2   : > { %972 = vrot.lane.b32.xlu1 %v2638_v24, %s2497_s13 }
  0xe3   : > { %876 = vrot.lane.b32.xlu0 %v2954_v43, %s2496_s30 }
  0xe4   : > { %v3315_v25 = vpop.permute.xlu1 %591 }
  0xe5   : > { %4515 = vst [vmem:[#allocation61_spill] sm:$0xff] %v3315_v25  ;;  %v3317_v33 = vpop.permute.xlu0 %589 }
  0xe6   : > { %1074 = vrot.lane.b32.xlu1 %v2671_v36, %s2498_s23 }
  0xe7   : > { %974 = vrot.lane.b32.xlu0 %v2632_v22, %s2497_s13 }
  0xe8   : > { %v3323_v14 = vpop.permute.xlu1 %595 }
  0xe9   : > { %4516 = vst [vmem:[#allocation62_spill] sm:$0xff] %v3323_v14  ;;  %v3325_v17 = vpop.permute.xlu0 %593 }
  0xea   : > { %4517 = vst [vmem:[#allocation63_spill] sm:$0xff] %v3325_v17  ;;  %1076 = vrot.lane.b32.xlu1 %v4518_v42, %s2498_s23  ;;  %v4548_v17 = vld [vmem:[#allocation32_spill] sm:$0xff] }
  0xeb   : > { %777 = vrot.lane.b32.xlu0 %v2671_v36, %s2495_s20 }
  0xec   : > { %v3331_v24 = vpop.permute.xlu1 %599 }
  0xed   : > { %4519 = vst [vmem:[#allocation7_spill] sm:$0xff] %v3331_v24  ;;  %v3333_v43 = vpop.permute.xlu0 %597 }
  0xee   : > { %4520 = vst [vmem:[#allocation64_spill] sm:$0xff] %v3333_v43  ;;  %779 = vrot.lane.b32.xlu1 %v4518_v42, %s2495_s20 }
  0xef   : > { %1175 = vrot.lane.b32.xlu0 %v2972_v23, %s2499_s28 }
  0xf0   : > { %v3339_v22 = vpop.permute.xlu1 %603 }
  0xf1   : > { %4521 = vst [vmem:[#allocation65_spill] sm:$0xff] %v3339_v22  ;;  %v3341_v14 = vpop.permute.xlu0 %601 }
  0xf2   : > { %4522 = vst [vmem:[#allocation66_spill] sm:$0xff] %v3341_v14  ;;  %1177 = vrot.lane.b32.xlu1 %v2967_v6, %s2499_s28  ;;  %v4527_v14 = vld [vmem:[#allocation9_spill] sm:$0xff] }
  0xf3   : > { %878 = vrot.lane.b32.xlu0 %v2972_v23, %s2496_s30 }
  0xf4   : > { %v3347_v36 = vpop.permute.xlu1 %607 }
  0xf5   : > { %4523 = vst [vmem:[#allocation67_spill] sm:$0xff] %v3347_v36  ;;  %v3349_v24 = vpop.permute.xlu0 %605 }
  0xf6   : > { %4524 = vst [vmem:[#allocation68_spill] sm:$0xff] %v3349_v24  ;;  %976 = vrot.lane.b32.xlu1 %v2659_v32, %s2497_s13  ;;  %v4530_v24 = vld [vmem:[#allocation8_spill] sm:$0xff] }
  0xf7   : > { %880 = vrot.lane.b32.xlu0 %v2967_v6, %s2496_s30 }
  0xf8   : > { %v3355_v42 = vpop.permute.xlu1 %611 }
  0xf9   : > { %4525 = vst [vmem:[#allocation69_spill] sm:$0xff] %v3355_v42  ;;  %v3357_v22 = vpop.permute.xlu0 %609 }
  0xfa   : > { %4526 = vst [vmem:[#allocation70_spill] sm:$0xff] %v3357_v22  ;;  %1078 = vrot.lane.b32.xlu1 %v4527_v14, %s2498_s23  ;;  %v4543_v22 = vld [vmem:[#allocation12_spill] sm:$0xff] }
  0xfb   : > { %978 = vrot.lane.b32.xlu0 %v2653_v30, %s2497_s13 }
  0xfc   : > { %v3363_v23 = vpop.permute.xlu1 %615 }
  0xfd   : > { %4528 = vst [vmem:[#allocation9_spill] sm:$0xff] %v3363_v23  ;;  %v3365_v36 = vpop.permute.xlu0 %613 }
  0xfe   : > { %4529 = vst [vmem:[#allocation71_spill] sm:$0xff] %v3365_v36  ;;  %1080 = vrot.lane.b32.xlu1 %v4530_v24, %s2498_s23  ;;  %v4541_v36 = vld [vmem:[#allocation13_spill] sm:$0xff] }
  0xff   : > { %781 = vrot.lane.b32.xlu0 %v4527_v14, %s2495_s20 }
 0x100   : > { %v3371_v32 = vpop.permute.xlu1 %619 }
 0x101   : > { %4531 = vst [vmem:[#allocation8_spill] sm:$0xff] %v3371_v32  ;;  %v3373_v6 = vpop.permute.xlu0 %617 }
 0x102   : > { %4532 = vst [vmem:[#allocation72_spill] sm:$0xff] %v3373_v6  ;;  %783 = vrot.lane.b32.xlu1 %v4530_v24, %s2495_s20 }
 0x103   : > { %1179 = vrot.lane.b32.xlu0 %v2985_v31, %s2499_s28 }
 0x104   : > { %v3379_v30 = vpop.permute.xlu1 %623 }
 0x105   : > { %4533 = vst [vmem:[#allocation73_spill] sm:$0xff] %v3379_v30  ;;  %v3381_v23 = vpop.permute.xlu0 %621 }
 0x106   : > { %4534 = vst [vmem:[#allocation74_spill] sm:$0xff] %v3381_v23  ;;  %1181 = vrot.lane.b32.xlu1 %v2980_v60, %s2499_s28  ;;  %v4539_v23 = vld [vmem:[#allocation11_spill] sm:$0xff] }
 0x107   : > { %882 = vrot.lane.b32.xlu0 %v2985_v31, %s2496_s30 }
 0x108   : > { %v3387_v14 = vpop.permute.xlu1 %627 }
 0x109   : > { %4535 = vst [vmem:[#allocation75_spill] sm:$0xff] %v3387_v14  ;;  %v3389_v32 = vpop.permute.xlu0 %625 }
 0x10a   : > { %4536 = vst [vmem:[#allocation76_spill] sm:$0xff] %v3389_v32  ;;  %980 = vrot.lane.b32.xlu1 %v2681_v40, %s2497_s13  ;;  %v4540_v32 = vld [vmem:[#allocation10_spill] sm:$0xff] }
 0x10b   : > { %884 = vrot.lane.b32.xlu0 %v2980_v60, %s2496_s30 }
 0x10c   : > { %v3395_v24 = vpop.permute.xlu1 %631 }
 0x10d   : > { %4537 = vst [vmem:[#allocation77_spill] sm:$0xff] %v3395_v24  ;;  %v3397_v30 = vpop.permute.xlu0 %629 }
 0x10e   : > { %4538 = vst [vmem:[#allocation78_spill] sm:$0xff] %v3397_v30  ;;  %1082 = vrot.lane.b32.xlu1 %v4539_v23, %s2498_s23 }
 0x10f   : > { %982 = vrot.lane.b32.xlu0 %v2675_v38, %s2497_s13 }
 0x110   : > { %v3403_v31 = vpop.permute.xlu1 %669 }
 0x111   : > { %v3405_v14 = vpop.permute.xlu0 %667 }
 0x112   : > { %1084 = vrot.lane.b32.xlu1 %v4540_v32, %s2498_s23 }
 0x113   : > { %785 = vrot.lane.b32.xlu0 %v4539_v23, %s2495_s20 }
 0x114   : > { %v3411_v40 = vpop.permute.xlu1 %673 }
 0x115   : > { %v3413_v60 = vpop.permute.xlu0 %671 }
 0x116   : > { %787 = vrot.lane.b32.xlu1 %v4540_v32, %s2495_s20 }
 0x117   : > { %1183 = vrot.lane.b32.xlu0 %v2998_v39, %s2499_s28 }
 0x118   : > { %v3419_v38 = vpop.permute.xlu1 %677 }
 0x119   : > { %v3421_v30 = vpop.permute.xlu0 %675 }
 0x11a   : > { %1185 = vrot.lane.b32.xlu1 %v2993_v20, %s2499_s28 }
 0x11b   : > { %886 = vrot.lane.b32.xlu0 %v2998_v39, %s2496_s30 }
 0x11c   : > { %v3427_v23 = vpop.permute.xlu1 %681 }
 0x11d   : > { %v3429_v24 = vpop.permute.xlu0 %679 }
 0x11e   : > { %984 = vrot.lane.b32.xlu1 %v2703_v48, %s2497_s13 }
 0x11f   : > { %888 = vrot.lane.b32.xlu0 %v2993_v20, %s2496_s30 }
 0x120   : > { %v3435_v32 = vpop.permute.xlu1 %685 }
 0x121   : > { %v3437_v6 = vpop.permute.xlu0 %683 }
 0x122   : > { %1086 = vrot.lane.b32.xlu1 %v4541_v36, %s2498_s23 }
 0x123   : > { %986 = vrot.lane.b32.xlu0 %v2697_v46, %s2497_s13 }
 0x124   : > { %v3443_v39 = vpop.permute.xlu1 %689 }
 0x125   : > { %4542 = vst [vmem:[#allocation11_spill] sm:$0xff] %v3443_v39  ;;  %v3445_v42 = vpop.permute.xlu0 %687 }
 0x126   : > { %1088 = vrot.lane.b32.xlu1 %v4543_v22, %s2498_s23 }
 0x127   : > { %789 = vrot.lane.b32.xlu0 %v4541_v36, %s2495_s20 }
 0x128   : > { %v3451_v48 = vpop.permute.xlu1 %693 }
 0x129   : > { %4544 = vst [vmem:[#allocation10_spill] sm:$0xff] %v3451_v48  ;;  %v3453_v20 = vpop.permute.xlu0 %691 }
 0x12a   : > { %4545 = vst [vmem:[#allocation13_spill] sm:$0xff] %v3453_v20  ;;  %791 = vrot.lane.b32.xlu1 %v4543_v22, %s2495_s20 }
 0x12b   : > { %1187 = vrot.lane.b32.xlu0 %v3011_v47, %s2499_s28 }
 0x12c   : > { %v3459_v46 = vpop.permute.xlu1 %697 }
 0x12d   : > { %4546 = vst [vmem:[#allocation12_spill] sm:$0xff] %v3459_v46  ;;  %v3461_v43 = vpop.permute.xlu0 %695 }
 0x12e   : > { %4547 = vst [vmem:[#allocation79_spill] sm:$0xff] %v3461_v43  ;;  %1189 = vrot.lane.b32.xlu1 %v4548_v17, %s2499_s28  ;;  %v4553_v43 = vld [vmem:[#allocation15_spill] sm:$0xff] }
 0x12f   : > { %890 = vrot.lane.b32.xlu0 %v3011_v47, %s2496_s30 }
 0x130   : > { %v3467_v36 = vpop.permute.xlu1 %701 }
 0x131   : > { %4549 = vst [vmem:[#allocation32_spill] sm:$0xff] %v3467_v36  ;;  %v3469_v48 = vpop.permute.xlu0 %699 }
 0x132   : > { %4550 = vst [vmem:[#allocation80_spill] sm:$0xff] %v3469_v48  ;;  %988 = vrot.lane.b32.xlu1 %v2725_v56, %s2497_s13  ;;  %v4555_v48 = vld [vmem:[#allocation14_spill] sm:$0xff] }
 0x133   : > { %892 = vrot.lane.b32.xlu0 %v4548_v17, %s2496_s30 }
 0x134   : > { %v3475_v22 = vpop.permute.xlu1 %705 }
 0x135   : > { %4551 = vst [vmem:[#allocation81_spill] sm:$0xff] %v3475_v22  ;;  %v3477_v46 = vpop.permute.xlu0 %703 }
 0x136   : > { %4552 = vst [vmem:[#allocation82_spill] sm:$0xff] %v3477_v46  ;;  %1090 = vrot.lane.b32.xlu1 %v4553_v43, %s2498_s23 }
 0x137   : > { %990 = vrot.lane.b32.xlu0 %v2719_v54, %s2497_s13  ;;  %v4556_v54 = vld [vmem:[#allocation33_spill] sm:$0xff] }
 0x138   : > { %v770_v47 = vpop.permute.xlu1 %769 }
 0x139   : > { %v3483_v36 = vpop.permute.xlu0 %707 }
 0x13a   : > { %4554 = vst [vmem:[#allocation15_spill] sm:$0xff] %v3483_v36  ;;  %1092 = vrot.lane.b32.xlu1 %v4555_v48, %s2498_s23 }
 0x13b   : > { %793 = vrot.lane.b32.xlu0 %v4553_v43, %s2495_s20 }
 0x13c   : > { %v871_v56 = vpop.permute.xlu1 %870 }
 0x13d   : > { %v772_v17 = vpop.permute.xlu0 %771 }
 0x13e   : > { %795 = vrot.lane.b32.xlu1 %v4555_v48, %s2495_s20  ;;  %v4557_v48 = vld [vmem:[#allocation5_spill] sm:$0xff] }
 0x13f   : > { %1191 = vrot.lane.b32.xlu0 %v3024_v55, %s2499_s28  ;;  %v1268_v20 = vsel %vm1267_vm2, %v4557_v48, %v3107_v21  ;;  %v4559_v48 = vld [vmem:[#allocation17_spill] sm:$0xff] }
 0x140   : > { %v969_v22 = vpop.permute.xlu1 %968  ;;  %v1301_v1 = vsel %vm1300_vm3, %v1268_v20, %v3277_v2 }
 0x141   : > { %v873_v46 = vpop.permute.xlu0 %872  ;;  %v1334_v61 = vsel %vm1333_vm4, %v1301_v1, %v3405_v14 }
 0x142   : > { %1193 = vrot.lane.b32.xlu1 %v4556_v54, %s2499_s28  ;;  %v1367_v21 = vsel %vm1366_vm5, %v1334_v61, %v770_v47 }
 0x143   : > { %894 = vrot.lane.b32.xlu0 %v3024_v55, %s2496_s30  ;;  %v1400_v20 = vsel %vm1399_vm6, %v1367_v21, %v871_v56 }
 0x144   : > { %v1071_v36 = vpop.permute.xlu1 %1070 }
 0x145   : > { %v971_v43 = vpop.permute.xlu0 %970 }
 0x146   : > { %992 = vrot.lane.b32.xlu1 %v2747_v3, %s2497_s13  ;;  %v4558_v3 = vld [vmem:[#allocation6_spill] sm:$0xff] }
 0x147   : > { %896 = vrot.lane.b32.xlu0 %v4556_v54, %s2496_s30  ;;  %v1269_v25 = vsel %vm1267_vm2, %v4558_v3, %v3124_v51  ;;  %v1433_v51 = vsel %vm1432_vm7, %v1400_v20, %v969_v22  ;;  %v4561_v3 = vld [vmem:[#allocation34_spill] sm:$0xff] }
 0x148   : > { %v1073_v55 = vpop.permute.xlu1 %1072  ;;  %v1302_v2 = vsel %vm1300_vm3, %v1269_v25, %v3275_v10  ;;  %v1466_v47 = vsel %vm1465_vm8, %v1433_v51, %v1071_v36  ;;  %v4560_v25 = vld [vmem:[#allocation16_spill] sm:$0xff] }
 0x149   : > { %v774_v39 = vpop.permute.xlu0 %773  ;;  %v1335_v1 = vsel %vm1333_vm4, %v1302_v2, %v3403_v31 }
 0x14a   : > { %1094 = vrot.lane.b32.xlu1 %v4559_v48, %s2498_s23  ;;  %v1368_v61 = vsel %vm1366_vm5, %v1335_v1, %v772_v17 }
 0x14b   : > { %994 = vrot.lane.b32.xlu0 %v2741_v62, %s2497_s13  ;;  %v1401_v10 = vsel %vm1399_vm6, %v1368_v61, %v873_v46  ;;  %v2401_v61 = vld [vmem:[%s2582_s5 + $0x20] sm:$0xff] }
 0x14c   : > { %v776_v14 = vpop.permute.xlu1 %775  ;;  %v1434_v56 = vsel %vm1432_vm7, %v1401_v10, %v971_v43 }
 0x14d   : > { %v1172_v54 = vpop.permute.xlu0 %1171  ;;  %v1467_v31 = vsel %vm1465_vm8, %v1434_v56, %v1073_v55 }
 0x14e   : > { %1096 = vrot.lane.b32.xlu1 %v4560_v25, %s2498_s23  ;;  %v1499_v62 = vsel %vm1498_vm9, %v1466_v47, %v1172_v54  ;;  %v1271_v47 = vsel %vm1267_vm2, %v2401_v61, %v3118_v26  ;;  %v4562_v54 = vld [vmem:[#allocation19_spill] sm:$0xff]  ;;  %v4564_v61 = vld [vmem:[#allocation21_spill] sm:$0xff] }
 0x14f   : > { %797 = vrot.lane.b32.xlu0 %v4559_v48, %s2495_s20  ;;  %2286 = vmatprep.mubr.msk.f32.mxu0 %vm1547_vm10, %v1499_v62  ;;  %v2400_v48 = vld [vmem:[%s2582_s5 + $0x18] sm:$0xff] }
 0x150   : > { %v1174_v22 = vpop.permute.xlu1 %1173  ;;  %v1270_v2 = vsel %vm1267_vm2, %v2400_v48, %v3101_v53  ;;  %v1304_v53 = vsel %vm1300_vm3, %v1271_v47, %v3283_v15 }
 0x151   : > { %v1500_v36 = vsel %vm1498_vm9, %v1467_v31, %v1174_v22  ;;  %v875_v17 = vpop.permute.xlu0 %874  ;;  %v1303_v20 = vsel %vm1300_vm3, %v1270_v2, %v3285_v9  ;;  %v1337_v9 = vsel %vm1333_vm4, %v1304_v53, %v3411_v40  ;;  %v4563_v31 = vld [vmem:[#allocation18_spill] sm:$0xff]  ;;  %v4565_v53 = vld [vmem:[#allocation20_spill] sm:$0xff] }
 0x152   : > { %799 = vrot.lane.b32.xlu1 %v4560_v25, %s2495_s20  ;;  %2287 = vmatmul.mubr.msk.f32.vlgmr.msra.gmra.mxu0 %vm1547_vm10, %v1500_v36  ;;  %v1336_v51 = vsel %vm1333_vm4, %v1303_v20, %v3413_v60  ;;  %v1370_v26 = vsel %vm1366_vm5, %v1337_v9, %v776_v14 }
 0x153   : > { %1195 = vrot.lane.b32.xlu0 %v3037_v63, %s2499_s28 }
 0x154   : > { %v973_v46 = vpop.permute.xlu1 %972 }
 0x155   : > { %v877_v43 = vpop.permute.xlu0 %876 }
 0x156   : > { %1197 = vrot.lane.b32.xlu1 %v4561_v3, %s2499_s28  ;;  %v1403_v56 = vsel %vm1399_vm6, %v1370_v26, %v877_v43 }
 0x157   : > { %898 = vrot.lane.b32.xlu0 %v3037_v63, %s2496_s30 }
 0x158   : > { %v1075_v55 = vpop.permute.xlu1 %1074 }
 0x159   : > { %v975_v21 = vpop.permute.xlu0 %974 }
 0x15a   : > { %996 = vrot.lane.b32.xlu1 %v2769_v19, %s2497_s13  ;;  %v1369_v19 = vsel %vm1366_vm5, %v1336_v51, %v774_v39 }
 0x15b   : > { %900 = vrot.lane.b32.xlu0 %v4561_v3, %s2496_s30  ;;  %v1402_v10 = vsel %vm1399_vm6, %v1369_v19, %v875_v17 }
 0x15c   : > { %v1077_v1 = vpop.permute.xlu1 %1076  ;;  %v1435_v60 = vsel %vm1432_vm7, %v1402_v10, %v973_v46 }
 0x15d   : > { %v778_v63 = vpop.permute.xlu0 %777  ;;  %v1468_v39 = vsel %vm1465_vm8, %v1435_v60, %v1075_v55  ;;  %v2402_v55 = vld [vmem:[%s2582_s5 + $0x30] sm:$0xff] }
 0x15e   : > { %1098 = vrot.lane.b32.xlu1 %v4562_v54, %s2498_s23 }
 0x15f   : > { %998 = vrot.lane.b32.xlu0 %v2763_v16, %s2497_s13  ;;  %v1436_v16 = vsel %vm1432_vm7, %v1403_v56, %v975_v21  ;;  %v1272_v21 = vsel %vm1267_vm2, %v2402_v55, %v3138_v5  ;;  %v3636_v56 = vld [vmem:[%s2582_s5 + $0x108] sm:$0xff] }
 0x160   : > { %v780_v25 = vpop.permute.xlu1 %779  ;;  %v1469_v40 = vsel %vm1465_vm8, %v1436_v16, %v1077_v1  ;;  %v1305_v48 = vsel %vm1300_vm3, %v1272_v21, %v3293_v0  ;;  %v2403_v1 = vld [vmem:[%s2582_s5 + $0x38] sm:$0xff] }
 0x161   : > { %v1176_v62 = vpop.permute.xlu0 %1175  ;;  %v1338_v20 = vsel %vm1333_vm4, %v1305_v48, %v3421_v30  ;;  %v1273_v51 = vsel %vm1267_vm2, %v2403_v1, %v3133_v52 }
 0x162   : > { %v1501_v15 = vsel %vm1498_vm9, %v1468_v39, %v1176_v62  ;;  %1100 = vrot.lane.b32.xlu1 %v4563_v31, %s2498_s23 }
 0x163   : > { %801 = vrot.lane.b32.xlu0 %v4562_v54, %s2495_s20  ;;  %2289 = vmatprep.mubr.msk.f32.mxu0 %vm1547_vm10, %v1501_v15  ;;  %v2405_v15 = vld [vmem:[%s2582_s5 + $0x48] sm:$0xff] }
 0x164   : > { %v1178_v14 = vpop.permute.xlu1 %1177 }
 0x165   : > { %v1502_v22 = vsel %vm1498_vm9, %v1469_v40, %v1178_v14  ;;  %v879_v36 = vpop.permute.xlu0 %878 }
 0x166   : > { %803 = vrot.lane.b32.xlu1 %v4563_v31, %s2495_s20  ;;  %2290 = vmatmul.mubr.msk.f32.gmra.mxu0 %vm1547_vm10, %v1502_v22  ;;  %v1274_v31 = vsel %vm1267_vm2, %v2405_v15, %v3146_v13  ;;  %v2406_v22 = vld [vmem:[%s2582_s5 + $0x50] sm:$0xff] }
 0x167   : > { %1199 = vrot.lane.b32.xlu0 %v3050_v18, %s2499_s28  ;;  %v1307_v16 = vsel %vm1300_vm3, %v1274_v31, %v3301_v12  ;;  %v3659_v12 = vld [vmem:[%s2582_s5 + $0x110] sm:$0xff] }
 0x168   : > { %v977_v17 = vpop.permute.xlu1 %976 }
 0x169   : > { %v881_v46 = vpop.permute.xlu0 %880 }
 0x16a   : > { %1201 = vrot.lane.b32.xlu1 %v3045_v7, %s2499_s28 }
 0x16b   : > { %902 = vrot.lane.b32.xlu0 %v3050_v18, %s2496_s30 }
 0x16c   : > { %v1079_v43 = vpop.permute.xlu1 %1078 }
 0x16d   : > { %v979_v3 = vpop.permute.xlu0 %978 }
 0x16e   : > { %1000 = vrot.lane.b32.xlu1 %v2791_v37, %s2497_s13  ;;  %v1371_v37 = vsel %vm1366_vm5, %v1338_v20, %v778_v63 }
 0x16f   : > { %904 = vrot.lane.b32.xlu0 %v3045_v7, %s2496_s30  ;;  %v1306_v7 = vsel %vm1300_vm3, %v1273_v51, %v3291_v41  ;;  %v1404_v5 = vsel %vm1399_vm6, %v1371_v37, %v879_v36  ;;  %v1275_v36 = vsel %vm1267_vm2, %v2406_v22, %v3144_v8  ;;  %v4567_v51 = vld [vmem:[#allocation22_spill] sm:$0xff]  ;;  %v2412_v22 = vld [vmem:[%s2582_s5 + $0x78] sm:$0xff] }
 0x170   : > { %v1081_v2 = vpop.permute.xlu1 %1080  ;;  %v1339_v0 = vsel %vm1333_vm4, %v1306_v7, %v3419_v38  ;;  %v1437_v30 = vsel %vm1432_vm7, %v1404_v5, %v977_v17 }
 0x171   : > { %v782_v18 = vpop.permute.xlu0 %781  ;;  %v1372_v52 = vsel %vm1366_vm5, %v1339_v0, %v780_v25  ;;  %v1470_v63 = vsel %vm1465_vm8, %v1437_v30, %v1079_v43  ;;  %v2408_v0 = vld [vmem:[%s2582_s5 + $0x60] sm:$0xff] }
 0x172   : > { %1102 = vrot.lane.b32.xlu1 %v4564_v61, %s2498_s23  ;;  %v1405_v54 = vsel %vm1399_vm6, %v1372_v52, %v881_v46  ;;  %v4566_v46 = vld [vmem:[#allocation23_spill] sm:$0xff]  ;;  %v1276_v30 = vsel %vm1267_vm2, %v2408_v0, %v3154_v45 }
 0x173   : > { %1002 = vrot.lane.b32.xlu0 %v2785_v34, %s2497_s13  ;;  %v1438_v34 = vsel %vm1432_vm7, %v1405_v54, %v979_v3 }
 0x174   : > { %v784_v47 = vpop.permute.xlu1 %783  ;;  %v1471_v38 = vsel %vm1465_vm8, %v1438_v34, %v1081_v2 }
 0x175   : > { %v1180_v19 = vpop.permute.xlu0 %1179 }
 0x176   : > { %v1503_v41 = vsel %vm1498_vm9, %v1470_v63, %v1180_v19  ;;  %1104 = vrot.lane.b32.xlu1 %v4565_v53, %s2498_s23  ;;  %v2409_v19 = vld [vmem:[%s2582_s5 + $0x68] sm:$0xff] }
 0x177   : > { %805 = vrot.lane.b32.xlu0 %v4564_v61, %s2495_s20  ;;  %2292 = vmatprep.mubr.msk.f32.mxu0 %vm1547_vm10, %v1503_v41  ;;  %v1277_v54 = vsel %vm1267_vm2, %v2409_v19, %v3152_v57 }
 0x178   : > { %v1182_v10 = vpop.permute.xlu1 %1181 }
 0x179   : > { %v1504_v9 = vsel %vm1498_vm9, %v1471_v38, %v1182_v10  ;;  %v883_v60 = vpop.permute.xlu0 %882 }
 0x17a   : > { %807 = vrot.lane.b32.xlu1 %v4565_v53, %s2495_s20  ;;  %2293 = vmatmul.mubr.msk.f32.gmra.mxu0 %vm1547_vm10, %v1504_v9  ;;  %v3703_v53 = vld [vmem:[%s2582_s5 + $0x120] sm:$0xff] }
 0x17b   : > { %1203 = vrot.lane.b32.xlu0 %v3063_v35, %s2499_s28 }
 0x17c   : > { %v981_v25 = vpop.permute.xlu1 %980 }
 0x17d   : > { %v885_v26 = vpop.permute.xlu0 %884 }
 0x17e   : > { %1205 = vrot.lane.b32.xlu1 %v3058_v44, %s2499_s28 }
 0x17f   : > { %906 = vrot.lane.b32.xlu0 %v3063_v35, %s2496_s30  ;;  %v1340_v35 = vsel %vm1333_vm4, %v1307_v16, %v3429_v24 }
 0x180   : > { %v1083_v39 = vpop.permute.xlu1 %1082  ;;  %v1373_v17 = vsel %vm1366_vm5, %v1340_v35, %v782_v18 }
 0x181   : > { %v983_v62 = vpop.permute.xlu0 %982  ;;  %v1406_v13 = vsel %vm1399_vm6, %v1373_v17, %v883_v60  ;;  %v4568_v60 = vld [vmem:[#allocation25_spill] sm:$0xff] }
 0x182   : > { %1004 = vrot.lane.b32.xlu1 %v3636_v56, %s2497_s13  ;;  %v1439_v8 = vsel %vm1432_vm7, %v1406_v13, %v981_v25 }
 0x183   : > { %908 = vrot.lane.b32.xlu0 %v3058_v44, %s2496_s30  ;;  %v1308_v44 = vsel %vm1300_vm3, %v1275_v36, %v3299_v11  ;;  %v1472_v55 = vsel %vm1465_vm8, %v1439_v8, %v1083_v39  ;;  %v1278_v36 = vsel %vm1267_vm2, %v2412_v22, %v3162_v27  ;;  %v4570_v27 = vld [vmem:[#allocation61_spill] sm:$0xff]  ;;  %v4581_v22 = vld [vmem:[#allocation35_spill] sm:$0xff] }
 0x184   : > { %v1085_v40 = vpop.permute.xlu1 %1084  ;;  %v1341_v24 = vsel %vm1333_vm4, %v1308_v44, %v3427_v23  ;;  %v1311_v17 = vsel %vm1300_vm3, %v1278_v36, %v3317_v33 }
 0x185   : > { %v786_v14 = vpop.permute.xlu0 %785  ;;  %v1374_v3 = vsel %vm1366_vm5, %v1341_v24, %v784_v47  ;;  %v1309_v47 = vsel %vm1300_vm3, %v1276_v30, %v3309_v59  ;;  %v1344_v44 = vsel %vm1333_vm4, %v1311_v17, %v3445_v42  ;;  %v2413_v24 = vld [vmem:[%s2582_s5 + $0x80] sm:$0xff]  ;;  %v4571_v42 = vld [vmem:[#allocation11_spill] sm:$0xff] }
 0x186   : > { %1106 = vrot.lane.b32.xlu1 %v4566_v46, %s2498_s23  ;;  %v1407_v11 = vsel %vm1399_vm6, %v1374_v3, %v885_v26  ;;  %v3723_v26 = vld [vmem:[%s2582_s5 + $0x128] sm:$0xff] }
 0x187   : > { %1006 = vrot.lane.b32.xlu0 %v3659_v12, %s2497_s13  ;;  %v1440_v2 = vsel %vm1432_vm7, %v1407_v11, %v983_v62 }
 0x188   : > { %v788_v43 = vpop.permute.xlu1 %787  ;;  %v1473_v23 = vsel %vm1465_vm8, %v1440_v2, %v1085_v40  ;;  %v4569_v40 = vld [vmem:[#allocation24_spill] sm:$0xff] }
 0x189   : > { %v1184_v21 = vpop.permute.xlu0 %1183 }
 0x18a   : > { %v1505_v48 = vsel %vm1498_vm9, %v1472_v55, %v1184_v21  ;;  %809 = vrot.lane.b32.xlu1 %v4566_v46, %s2495_s20 }
 0x18b   : > { %709 = vrot.lane.b32.xlu0 %v3659_v12, %s2494_s8  ;;  %2295 = vmatprep.mubr.msk.f32.mxu0 %vm1547_vm10, %v1505_v48 }
 0x18c   : > { %v1186_v20 = vpop.permute.xlu1 %1185 }
 0x18d   : > { %v1506_v18 = vsel %vm1498_vm9, %v1473_v23, %v1186_v20  ;;  %v887_v1 = vpop.permute.xlu0 %886  ;;  %v3769_v20 = vld [vmem:[%s2582_s5 + $0x138] sm:$0xff] }
 0x18e   : > { %1207 = vrot.lane.b32.xlu1 %v3076_v58, %s2499_s28  ;;  %2296 = vmatmul.mubr.msk.f32.gmra.mxu0 %vm1547_vm10, %v1506_v18 }
 0x18f   : > { %1108 = vrot.lane.b32.xlu0 %v4567_v51, %s2498_s23 }
 0x190   : > { %v985_v37 = vpop.permute.xlu1 %984 }
 0x191   : > { %v889_v61 = vpop.permute.xlu0 %888 }
 0x192   : > { %910 = vrot.lane.b32.xlu1 %v3076_v58, %s2496_s30  ;;  %v1342_v58 = vsel %vm1333_vm4, %v1309_v47, %v3437_v6 }
 0x193   : > { %811 = vrot.lane.b32.xlu0 %v4567_v51, %s2495_s20  ;;  %v1375_v41 = vsel %vm1366_vm5, %v1342_v58, %v786_v14  ;;  %v2416_v58 = vld [vmem:[%s2582_s5 + $0x90] sm:$0xff] }
 0x194   : > { %v1087_v7 = vpop.permute.xlu1 %1086  ;;  %v1408_v45 = vsel %vm1399_vm6, %v1375_v41, %v887_v1  ;;  %v4576_v41 = vld [vmem:[#allocation63_spill] sm:$0xff] }
 0x195   : > { %v987_v5 = vpop.permute.xlu0 %986  ;;  %v1441_v57 = vsel %vm1432_vm7, %v1408_v45, %v985_v37 }
 0x196   : > { %912 = vrot.lane.b32.xlu1 %v3071_v49, %s2496_s30  ;;  %v1474_v38 = vsel %vm1465_vm8, %v1441_v57, %v1087_v7  ;;  %v3783_v7 = vld [vmem:[%s2582_s5 + $0x140] sm:$0xff] }
 0x197   : > { %1209 = vrot.lane.b32.xlu0 %v3071_v49, %s2499_s28  ;;  %v1310_v49 = vsel %vm1300_vm3, %v1277_v54, %v3307_v28  ;;  %v4575_v54 = vld [vmem:[#allocation26_spill] sm:$0xff] }
 0x198   : > { %v1089_v52 = vpop.permute.xlu1 %1088  ;;  %v1343_v59 = vsel %vm1333_vm4, %v1310_v49, %v3435_v32 }
 0x199   : > { %v790_v63 = vpop.permute.xlu0 %789  ;;  %v1376_v34 = vsel %vm1366_vm5, %v1343_v59, %v788_v43  ;;  %v4577_v59 = vld [vmem:[#allocation13_spill] sm:$0xff] }
 0x19a   : > { %711 = vrot.lane.b32.xlu1 %v3703_v53, %s2494_s8  ;;  %v1409_v9 = vsel %vm1399_vm6, %v1376_v34, %v889_v61  ;;  %v1377_v8 = vsel %vm1366_vm5, %v1344_v44, %v790_v63  ;;  %v4572_v61 = vld [vmem:[#allocation27_spill] sm:$0xff]  ;;  %v4574_v63 = vld [vmem:[#allocation42_spill] sm:$0xff] }
 0x19b   : > { %1008 = vrot.lane.b32.xlu0 %v3703_v53, %s2497_s13  ;;  %v1442_v25 = vsel %vm1432_vm7, %v1409_v9, %v987_v5  ;;  %v1280_v19 = vsel %vm1267_vm2, %v2416_v58, %v4574_v63  ;;  %v2417_v34 = vld [vmem:[%s2582_s5 + $0x98] sm:$0xff] }
 0x19c   : > { %v792_v6 = vpop.permute.xlu1 %791  ;;  %v1475_v32 = vsel %vm1465_vm8, %v1442_v25, %v1089_v52  ;;  %v4573_v52 = vld [vmem:[#allocation36_spill] sm:$0xff]  ;;  %v1313_v49 = vsel %vm1300_vm3, %v1280_v19, %v4576_v41 }
 0x19d   : > { %v1188_v10 = vpop.permute.xlu0 %1187  ;;  %v1346_v57 = vsel %vm1333_vm4, %v1313_v49, %v4577_v59 }
 0x19e   : > { %v1507_v28 = vsel %vm1498_vm9, %v1474_v38, %v1188_v10  ;;  %1110 = vrot.lane.b32.xlu1 %v4568_v60, %s2498_s23  ;;  %v4578_v38 = vld [vmem:[#allocation41_spill] sm:$0xff] }
 0x19f   : > { %1010 = vrot.lane.b32.xlu0 %v3723_v26, %s2497_s13  ;;  %2298 = vmatprep.mubr.msk.f32.mxu0 %vm1547_vm10, %v1507_v28  ;;  %v1281_v10 = vsel %vm1267_vm2, %v2417_v34, %v4578_v38  ;;  %v4579_v28 = vld [vmem:[#allocation62_spill] sm:$0xff] }
 0x1a0   : > { %v1190_v39 = vpop.permute.xlu1 %1189 }
 0x1a1   : > { %v1508_v62 = vsel %vm1498_vm9, %v1475_v32, %v1190_v39  ;;  %v891_v15 = vpop.permute.xlu0 %890  ;;  %v4580_v32 = vld [vmem:[#allocation10_spill] sm:$0xff] }
 0x1a2   : > { %813 = vrot.lane.b32.xlu1 %v4568_v60, %s2495_s20  ;;  %2299 = vmatmul.mubr.msk.f32.gmra.mxu0 %vm1547_vm10, %v1508_v62  ;;  %v1410_v33 = vsel %vm1399_vm6, %v1377_v8, %v891_v15  ;;  %v1314_v60 = vsel %vm1300_vm3, %v1281_v10, %v4579_v28 }
 0x1a3   : > { %713 = vrot.lane.b32.xlu0 %v3723_v26, %s2494_s8  ;;  %v1347_v39 = vsel %vm1333_vm4, %v1314_v60, %v4580_v32 }
 0x1a4   : > { %v989_v31 = vpop.permute.xlu1 %988 }
 0x1a5   : > { %v893_v16 = vpop.permute.xlu0 %892  ;;  %v1443_v55 = vsel %vm1432_vm7, %v1410_v33, %v989_v31 }
 0x1a6   : > { %1211 = vrot.lane.b32.xlu1 %v3089_v29, %s2499_s28 }
 0x1a7   : > { %1112 = vrot.lane.b32.xlu0 %v4569_v40, %s2498_s23 }
 0x1a8   : > { %v1091_v35 = vpop.permute.xlu1 %1090 }
 0x1a9   : > { %v991_v14 = vpop.permute.xlu0 %990  ;;  %v1476_v11 = vsel %vm1465_vm8, %v1443_v55, %v1091_v35  ;;  %v4583_v55 = vld [vmem:[#allocation44_spill] sm:$0xff] }
 0x1aa   : > { %914 = vrot.lane.b32.xlu1 %v3089_v29, %s2496_s30  ;;  %v1279_v29 = vsel %vm1267_vm2, %v2413_v24, %v3160_v50  ;;  %v3829_v24 = vld [vmem:[%s2582_s5 + $0x150] sm:$0xff] }
 0x1ab   : > { %815 = vrot.lane.b32.xlu0 %v4569_v40, %s2495_s20  ;;  %v1312_v43 = vsel %vm1300_vm3, %v1279_v29, %v4570_v27  ;;  %v4582_v27 = vld [vmem:[#allocation29_spill] sm:$0xff] }
 0x1ac   : > { %v1093_v46 = vpop.permute.xlu1 %1092  ;;  %v1345_v3 = vsel %vm1333_vm4, %v1312_v43, %v4571_v42  ;;  %v3839_v43 = vld [vmem:[%s2582_s5 + $0x158] sm:$0xff] }
 0x1ad   : > { %v794_v13 = vpop.permute.xlu0 %793  ;;  %v1378_v50 = vsel %vm1366_vm5, %v1345_v3, %v792_v6  ;;  %v2420_v3 = vld [vmem:[%s2582_s5 + $0xa8] sm:$0xff] }
 0x1ae   : > { %916 = vrot.lane.b32.xlu1 %v3084_v4, %s2496_s30  ;;  %v1411_v2 = vsel %vm1399_vm6, %v1378_v50, %v893_v16  ;;  %v1379_v9 = vsel %vm1366_vm5, %v1346_v57, %v794_v13  ;;  %v4584_v50 = vld [vmem:[#allocation64_spill] sm:$0xff] }
 0x1af   : > { %1213 = vrot.lane.b32.xlu0 %v3084_v4, %s2499_s28  ;;  %v1444_v4 = vsel %vm1432_vm7, %v1411_v2, %v991_v14  ;;  %v4585_v2 = vld [vmem:[#allocation79_spill] sm:$0xff] }
 0x1b0   : > { %v796_v21 = vpop.permute.xlu1 %795  ;;  %v1477_v18 = vsel %vm1465_vm8, %v1444_v4, %v1093_v46 }
 0x1b1   : > { %v1192_v48 = vpop.permute.xlu0 %1191  ;;  %v1380_v31 = vsel %vm1366_vm5, %v1347_v39, %v796_v21  ;;  %v1282_v21 = vsel %vm1267_vm2, %v2420_v3, %v4583_v55  ;;  %v4598_v3 = vld [vmem:[#allocation32_spill] sm:$0xff] }
 0x1b2   : > { %v1509_v23 = vsel %vm1498_vm9, %v1476_v11, %v1192_v48  ;;  %715 = vrot.lane.b32.xlu1 %v3769_v20, %s2494_s8  ;;  %v1315_v11 = vsel %vm1300_vm3, %v1282_v21, %v4584_v50 }
 0x1b3   : > { %1012 = vrot.lane.b32.xlu0 %v3769_v20, %s2497_s13  ;;  %2301 = vmatprep.mubr.msk.f32.mxu0 %vm1547_vm10, %v1509_v23  ;;  %v1348_v23 = vsel %vm1333_vm4, %v1315_v11, %v4585_v2 }
 0x1b4   : > { %v1194_v1 = vpop.permute.xlu1 %1193 }
 0x1b5   : > { %v1510_v51 = vsel %vm1498_vm9, %v1477_v18, %v1194_v1  ;;  %v895_v37 = vpop.permute.xlu0 %894  ;;  %v2421_v18 = vld [vmem:[%s2582_s5 + $0xb0] sm:$0xff] }
 0x1b6   : > { %1114 = vrot.lane.b32.xlu1 %v4572_v61, %s2498_s23  ;;  %2302 = vmatmul.mubr.msk.f32.gmra.mxu0 %vm1547_vm10, %v1510_v51  ;;  %v1412_v25 = vsel %vm1399_vm6, %v1379_v9, %v895_v37  ;;  %v4586_v1 = vld [vmem:[#allocation43_spill] sm:$0xff]  ;;  %v4591_v9 = vld [vmem:[#allocation37_spill] sm:$0xff] }
 0x1b7   : > { %1014 = vrot.lane.b32.xlu0 %v3783_v7, %s2497_s13  ;;  %v1283_v51 = vsel %vm1267_vm2, %v2421_v18, %v4586_v1 }
 0x1b8   : > { %v993_v5 = vpop.permute.xlu1 %992 }
 0x1b9   : > { %v897_v0 = vpop.permute.xlu0 %896  ;;  %v1445_v62 = vsel %vm1432_vm7, %v1412_v25, %v993_v5  ;;  %v4588_v5 = vld [vmem:[#allocation7_spill] sm:$0xff]  ;;  %v3886_v25 = vld [vmem:[%s2582_s5 + $0x168] sm:$0xff] }
 0x1ba   : > { %817 = vrot.lane.b32.xlu1 %v4572_v61, %s2495_s20  ;;  %v1413_v35 = vsel %vm1399_vm6, %v1380_v31, %v897_v0  ;;  %v4587_v61 = vld [vmem:[#allocation38_spill] sm:$0xff]  ;;  %v1316_v0 = vsel %vm1300_vm3, %v1283_v51, %v4588_v5 }
 0x1bb   : > { %717 = vrot.lane.b32.xlu0 %v3783_v7, %s2494_s8  ;;  %v4593_v31 = vld [vmem:[#allocation46_spill] sm:$0xff] }
 0x1bc   : > { %v1095_v30 = vpop.permute.xlu1 %1094  ;;  %v4600_v51 = vld [vmem:[#allocation30_spill] sm:$0xff] }
 0x1bd   : > { %v995_v47 = vpop.permute.xlu0 %994  ;;  %v1478_v16 = vsel %vm1465_vm8, %v1445_v62, %v1095_v30  ;;  %v4592_v62 = vld [vmem:[#allocation31_spill] sm:$0xff] }
 0x1be   : > { %1215 = vrot.lane.b32.xlu1 %v4573_v52, %s2499_s28  ;;  %v1446_v36 = vsel %vm1432_vm7, %v1413_v35, %v995_v47  ;;  %v4589_v47 = vld [vmem:[#allocation28_spill] sm:$0xff]  ;;  %v4594_v35 = vld [vmem:[#allocation66_spill] sm:$0xff] }
 0x1bf   : > { %1116 = vrot.lane.b32.xlu0 %v4575_v54, %s2498_s23 }
 0x1c0   : > { %v1097_v45 = vpop.permute.xlu1 %1096 }
 0x1c1   : > { %v798_v6 = vpop.permute.xlu0 %797  ;;  %v1479_v17 = vsel %vm1465_vm8, %v1446_v36, %v1097_v45  ;;  %v4595_v36 = vld [vmem:[#allocation80_spill] sm:$0xff] }
 0x1c2   : > { %918 = vrot.lane.b32.xlu1 %v4573_v52, %s2496_s30  ;;  %v1381_v37 = vsel %vm1366_vm5, %v1348_v23, %v798_v6  ;;  %v4590_v52 = vld [vmem:[#allocation12_spill] sm:$0xff] }
 0x1c3   : > { %819 = vrot.lane.b32.xlu0 %v4575_v54, %s2495_s20  ;;  %v1349_v58 = vsel %vm1333_vm4, %v1316_v0, %v4590_v52  ;;  %v258_v52 = vld [vmem:[%s2582_s5 + $0x188] sm:$0xff] }
 0x1c4   : > { %v800_v15 = vpop.permute.xlu1 %799 }
 0x1c5   : > { %v1196_v40 = vpop.permute.xlu0 %1195  ;;  %v1382_v54 = vsel %vm1366_vm5, %v1349_v58, %v800_v15  ;;  %v2423_v15 = vld [vmem:[%s2582_s5 + $0xc0] sm:$0xff] }
 0x1c6   : > { %v1511_v14 = vsel %vm1498_vm9, %v1478_v16, %v1196_v40  ;;  %920 = vrot.lane.b32.xlu1 %v4581_v22, %s2496_s30  ;;  %v1284_v16 = vsel %vm1267_vm2, %v2423_v15, %v4593_v31  ;;  %v3898_v40 = vld [vmem:[%s2582_s5 + $0x170] sm:$0xff] }
 0x1c7   : > { %1217 = vrot.lane.b32.xlu0 %v4581_v22, %s2499_s28  ;;  %2304 = vmatprep.mubr.msk.f32.mxu0 %vm1547_vm10, %v1511_v14  ;;  %v1317_v14 = vsel %vm1300_vm3, %v1284_v16, %v4594_v35  ;;  %v866_v16 = vrot.slane %v258_v52, 2 }
 0x1c8   : > { %v1198_v46 = vpop.permute.xlu1 %1197 }
 0x1c9   : > { %v1512_v44 = vsel %vm1498_vm9, %v1479_v17, %v1198_v46  ;;  %v899_v13 = vpop.permute.xlu0 %898  ;;  %v1350_v17 = vsel %vm1333_vm4, %v1317_v14, %v4595_v36 }
 0x1ca   : > { %719 = vrot.lane.b32.xlu1 %v3829_v24, %s2494_s8  ;;  %2305 = vmatmul.mubr.msk.f32.gmra.mxu0 %vm1547_vm10, %v1512_v44  ;;  %v1414_v30 = vsel %vm1399_vm6, %v1381_v37, %v899_v13  ;;  %v2425_v44 = vld [vmem:[%s2582_s5 + $0xc8] sm:$0xff] }
 0x1cb   : > { %1016 = vrot.lane.b32.xlu0 %v3829_v24, %s2497_s13  ;;  %v4596_v13 = vld [vmem:[#allocation45_spill] sm:$0xff] }
 0x1cc   : > { %v997_v29 = vpop.permute.xlu1 %996 }
 0x1cd   : > { %v901_v8 = vpop.permute.xlu0 %900  ;;  %v1447_v63 = vsel %vm1432_vm7, %v1414_v30, %v997_v29  ;;  %v1285_v29 = vsel %vm1267_vm2, %v2425_v44, %v4596_v13  ;;  %v4605_v44 = vld [vmem:[#allocation47_spill] sm:$0xff] }
 0x1ce   : > { %1118 = vrot.lane.b32.xlu1 %v4582_v27, %s2498_s23  ;;  %v1415_v45 = vsel %vm1399_vm6, %v1382_v54, %v901_v8  ;;  %v765_v54 = vrot.slane %v258_v52, 1 }
 0x1cf   : > { %1018 = vrot.lane.b32.xlu0 %v3839_v43, %s2497_s13 }
 0x1d0   : > { %v1099_v33 = vpop.permute.xlu1 %1098 }
 0x1d1   : > { %v999_v42 = vpop.permute.xlu0 %998  ;;  %v1480_v41 = vsel %vm1465_vm8, %v1447_v63, %v1099_v33  ;;  %v4601_v63 = vld [vmem:[#allocation39_spill] sm:$0xff] }
 0x1d2   : > { %821 = vrot.lane.b32.xlu1 %v4582_v27, %s2495_s20  ;;  %v1448_v57 = vsel %vm1432_vm7, %v1415_v45, %v999_v42  ;;  %v4597_v27 = vld [vmem:[#allocation65_spill] sm:$0xff]  ;;  %v2426_v45 = vld [vmem:[%s2582_s5 + $0xd8] sm:$0xff] }
 0x1d3   : > { %721 = vrot.lane.b32.xlu0 %v3839_v43, %s2494_s8  ;;  %v1318_v33 = vsel %vm1300_vm3, %v1285_v29, %v4597_v27 }
 0x1d4   : > { %v1101_v48 = vpop.permute.xlu1 %1100  ;;  %v1351_v55 = vsel %vm1333_vm4, %v1318_v33, %v4598_v3  ;;  %v4607_v3 = vld [vmem:[#allocation81_spill] sm:$0xff] }
 0x1d5   : > { %v802_v4 = vpop.permute.xlu0 %801  ;;  %v1481_v6 = vsel %vm1465_vm8, %v1448_v57, %v1101_v48 }
 0x1d6   : > { %1219 = vrot.lane.b32.xlu1 %v4587_v61, %s2499_s28  ;;  %v1383_v8 = vsel %vm1366_vm5, %v1350_v17, %v802_v4  ;;  %v4599_v4 = vld [vmem:[#allocation40_spill] sm:$0xff] }
 0x1d7   : > { %1120 = vrot.lane.b32.xlu0 %v4589_v47, %s2498_s23 }
 0x1d8   : > { %v804_v19 = vpop.permute.xlu1 %803 }
 0x1d9   : > { %v1200_v49 = vpop.permute.xlu0 %1199  ;;  %v1384_v11 = vsel %vm1366_vm5, %v1351_v55, %v804_v19 }
 0x1da   : > { %v1513_v59 = vsel %vm1498_vm9, %v1480_v41, %v1200_v49  ;;  %922 = vrot.lane.b32.xlu1 %v4587_v61, %s2496_s30 }
 0x1db   : > { %823 = vrot.lane.b32.xlu0 %v4589_v47, %s2495_s20  ;;  %2307 = vmatprep.mubr.msk.f32.mxu0 %vm1547_vm10, %v1513_v59  ;;  %v257_v47 = vld [vmem:[%s2582_s5 + $0x180] sm:$0xff] }
 0x1dc   : > { %v1202_v34 = vpop.permute.xlu1 %1201  ;;  %v764_v19 = vrot.slane %v257_v47, 1  ;;  %v4602_v59 = vld [vmem:[#allocation48_spill] sm:$0xff]  ;;  %v865_v31 = vrot.slane %v257_v47, 2 }
 0x1dd   : > { %v1514_v38 = vsel %vm1498_vm9, %v1481_v6, %v1202_v34  ;;  %v903_v10 = vpop.permute.xlu0 %902  ;;  %v1286_v57 = vsel %vm1267_vm2, %v2426_v45, %v4602_v59  ;;  %v4603_v6 = vld [vmem:[#allocation68_spill] sm:$0xff] }
 0x1de   : > { %924 = vrot.lane.b32.xlu1 %v4591_v9, %s2496_s30  ;;  %2308 = vmatmul.mubr.msk.f32.gmra.mxu0 %vm1547_vm10, %v1514_v38  ;;  %v1416_v42 = vsel %vm1399_vm6, %v1383_v8, %v903_v10  ;;  %v1319_v34 = vsel %vm1300_vm3, %v1286_v57, %v4603_v6  ;;  %v766_v38 = vsel %vm311_vm0, %v764_v19, %v765_v54  ;;  %v4604_v10 = vld [vmem:[#allocation82_spill] sm:$0xff]  ;;  %v4606_v8 = vld [vmem:[#allocation67_spill] sm:$0xff] }
 0x1df   : > { %1221 = vrot.lane.b32.xlu0 %v4591_v9, %s2499_s28  ;;  %v1352_v9 = vsel %vm1333_vm4, %v1319_v34, %v4604_v10  ;;  %v867_v29 = vsel %vm488_vm1, %v865_v31, %v866_v16  ;;  %v4609_v34 = vld [vmem:[#allocation70_spill] sm:$0xff] }
 0x1e0   : > { %v1001_v28 = vpop.permute.xlu1 %1000 }
 0x1e1   : > { %v905_v60 = vpop.permute.xlu0 %904  ;;  %v1449_v21 = vsel %vm1432_vm7, %v1416_v42, %v1001_v28 }
 0x1e2   : > { %723 = vrot.lane.b32.xlu1 %v3886_v25, %s2494_s8  ;;  %v1417_v23 = vsel %vm1399_vm6, %v1384_v11, %v905_v60 }
 0x1e3   : > { %1020 = vrot.lane.b32.xlu0 %v3886_v25, %s2497_s13 }
 0x1e4   : > { %v1103_v32 = vpop.permute.xlu1 %1102 }
 0x1e5   : > { %v1003_v39 = vpop.permute.xlu0 %1002  ;;  %v1482_v48 = vsel %vm1465_vm8, %v1449_v21, %v1103_v32 }
 0x1e6   : > { %1122 = vrot.lane.b32.xlu1 %v4592_v62, %s2498_s23  ;;  %v1450_v1 = vsel %vm1432_vm7, %v1417_v23, %v1003_v39  ;;  %v259_v39 = vld [vmem:[%s2582_s5 + $0x190] sm:$0x3] }
 0x1e7   : > { %1022 = vrot.lane.b32.xlu0 %v3898_v40, %s2497_s13 }
 0x1e8   : > { %v1105_v22 = vpop.permute.xlu1 %1104 }
 0x1e9   : > { %v806_v46 = vpop.permute.xlu0 %805  ;;  %v1483_v37 = vsel %vm1465_vm8, %v1450_v1, %v1105_v22  ;;  %v767_v22 = vrot.slane %v259_v39, 1 }
 0x1ea   : > { %825 = vrot.lane.b32.xlu1 %v4592_v62, %s2495_s20  ;;  %v1385_v60 = vsel %vm1366_vm5, %v1352_v9, %v806_v46  ;;  %v2427_v46 = vld [vmem:[%s2582_s5 + $0xe0] sm:$0xff] }
 0x1eb   : > { %725 = vrot.lane.b32.xlu0 %v3898_v40, %s2494_s8  ;;  %v1287_v13 = vsel %vm1267_vm2, %v2427_v46, %v4605_v44  ;;  %v768_v42 = vsel %vm311_vm0, %v765_v54, %v767_v22 }
 0x1ec   : > { %v808_v50 = vpop.permute.xlu1 %807  ;;  %v1320_v27 = vsel %vm1300_vm3, %v1287_v13, %v4606_v8 }
 0x1ed   : > { %v1204_v2 = vpop.permute.xlu0 %1203  ;;  %v1353_v55 = vsel %vm1333_vm4, %v1320_v27, %v4607_v3 }
 0x1ee   : > { %1223 = vrot.lane.b32.xlu1 %v4599_v4, %s2499_s28  ;;  %v1515_v18 = vsel %vm1498_vm9, %v1482_v48, %v1204_v2  ;;  %v1386_v11 = vsel %vm1366_vm5, %v1353_v55, %v808_v50  ;;  %v868_v2 = vrot.slane %v259_v39, 2 }
 0x1ef   : > { %1124 = vrot.lane.b32.xlu0 %v4600_v51, %s2498_s23  ;;  %2310 = vmatprep.mubr.msk.f32.mxu1 %vm1547_vm10, %v1515_v18 }
 0x1f0   : > { %v1206_v61 = vpop.permute.xlu1 %1205  ;;  %v869_v50 = vsel %vm488_vm1, %v866_v16, %v868_v2 }
 0x1f1   : > { %v1516_v5 = vsel %vm1498_vm9, %v1483_v37, %v1206_v61  ;;  %v907_v0 = vpop.permute.xlu0 %906  ;;  %v261_v61 = vld [vmem:[%s2582_s5 + $0x1a0] sm:$0xff] }
 0x1f2   : > { %926 = vrot.lane.b32.xlu1 %v4599_v4, %s2496_s30  ;;  %2311 = vmatmul.mubr.msk.f32.vlgmr.msra.gmra.mxu1 %vm1547_vm10, %v1516_v5  ;;  %v1418_v62 = vsel %vm1399_vm6, %v1385_v60, %v907_v0  ;;  %v262_v5 = vld [vmem:[%s2582_s5 + $0x1a8] sm:$0x3]  ;;  %v1167_v59 = vrot.slane %v261_v61, 2  ;;  %v4610_v60 = vld [vmem:[#allocation15_spill] sm:$0xff] }
 0x1f3   : > { %827 = vrot.lane.b32.xlu0 %v4600_v51, %s2495_s20  ;;  %v1169_v6 = vrot.slane %v262_v5, 2 }
 0x1f4   : > { %v1005_v30 = vpop.permute.xlu1 %1004 }
 0x1f5   : > { %v909_v58 = vpop.permute.xlu0 %908  ;;  %v1451_v15 = vsel %vm1432_vm7, %v1418_v62, %v1005_v30  ;;  %v260_v30 = vld [vmem:[%s2582_s5 + $0x198] sm:$0xff]  ;;  %v1170_v46 = vsel %vm488_vm1, %v1167_v59, %v1169_v6 }
 0x1f6   : > { %928 = vrot.lane.b32.xlu1 %v4601_v63, %s2496_s30  ;;  %v1419_v48 = vsel %vm1399_vm6, %v1386_v11, %v909_v58  ;;  %v1065_v19 = vrot.slane %v260_v30, 1  ;;  %v1166_v62 = vrot.slane %v260_v30, 2 }
 0x1f7   : > { %1225 = vrot.lane.b32.xlu0 %v4601_v63, %s2499_s28  ;;  %v4003_v63 = vld [vmem:[%s4384_s2] ss:$0 sm:$0xff] }
 0x1f8   : > { %v1107_v41 = vpop.permute.xlu1 %1106 }
 0x1f9   : > { %v1007_v49 = vpop.permute.xlu0 %1006  ;;  %v1484_v35 = vsel %vm1465_vm8, %v1451_v15, %v1107_v41  ;;  %v2428_v41 = vld [vmem:[%s2582_s5 + $0xf0] sm:$0xff] }
 0x1fa   : > { %727 = vrot.lane.b32.xlu1 %v257_v47, %s2494_s8  ;;  %v1452_v23 = vsel %vm1432_vm7, %v1419_v48, %v1007_v49  ;;  %v4608_v49 = vld [vmem:[#allocation50_spill] sm:$0xff] }
 0x1fb   : > { %1024 = vrot.lane.b32.xlu0 %v257_v47, %s2497_s13  ;;  %v1066_v47 = vrot.slane %v261_v61, 1  ;;  %v1288_v45 = vsel %vm1267_vm2, %v2428_v41, %v4608_v49 }
 0x1fc   : > { %v3953_v28 = vpop.permute.xlu1 %809 }
 0x1fd   : > { %v3956_v32 = vpop.permute.xlu0 %709  ;;  %v1067_v16 = vsel %vm311_vm0, %v1065_v19, %v1066_v47 }
 0x1fe   : > { %1126 = vrot.lane.b32.xlu1 %v766_v38, %s2498_s23 }
 0x1ff   : > { %1026 = vrot.lane.b32.xlu0 %v258_v52, %s2497_s13 }
 0x200   : > { %v1208_v14 = vpop.permute.xlu1 %1207 }
 0x201   : > { %v1517_v36 = vsel %vm1498_vm9, %v1484_v35, %v1208_v14  ;;  %v1109_v17 = vpop.permute.xlu0 %1108 }
 0x202   : > { %829 = vrot.lane.b32.xlu1 %v766_v38, %s2495_s20  ;;  %2313 = vmatprep.mubr.msk.f32.mxu1 %vm1547_vm10, %v1517_v36  ;;  %v1485_v18 = vsel %vm1465_vm8, %v1452_v23, %v1109_v17  ;;  %v1321_v38 = vsel %vm1300_vm3, %v1288_v45, %v4609_v34  ;;  %v2429_v23 = vld [vmem:[%s2582_s5 + $0xf8] sm:$0xff]  ;;  %s196_s5 = sand.u32 1, %s2482_s16  }
 0x203   : > { %729 = vrot.lane.b32.xlu0 %v258_v52, %s2494_s8  ;;  %s2226_s8 = sshll.u32 %s2576_s27, 8  ;;  %v1068_v52 = vrot.slane %v262_v5, 1  ;;  %v1354_v39 = vsel %vm1333_vm4, %v1321_v38, %v4610_v60  ;;  %v4613_v34 = vld [vmem:[#allocation52_spill] sm:$0xff]  ;;  %s2185_s7 = sshll.u32 %s196_s5, 1 }
 0x204   : > { %v911_v33 = vpop.permute.xlu1 %910  ;;  %s4012_s27 = scalar_lea.vmem %s4385_s3, %s2226_s8  ;;  %v1387_v35 = vsel %vm1366_vm5, %v1354_v39, %v3953_v28  ;;  %v1290_v38 = vsel %vm1267_vm2, %v3636_v56, %v4613_v34  ;;  %s198_s10 = scalar_lea.vmem [#allocation2], %s2185_s7 }
 0x205   : > { %v3977_v21 = vpop.permute.xlu0 %811  ;;  %v1069_v9 = vsel %vm311_vm0, %v1066_v47, %v1068_v52  ;;  %v1420_v17 = vsel %vm1399_vm6, %v1387_v35, %v911_v33  ;;  %s2097_s11 = sshll.u32 %s198_s10, 4  ;;  %s2081_s22 = scalar_lea.sflag [#allocation3], %s196_s5  ;;  %s2098_s11 = int_to_ptr.vmem [resolvable:$true] %s2097_s11 }
 0x206   : > { %1227 = vrot.lane.b32.xlu1 %v867_v29, %s2499_s28 }
 0x207   : > { %1128 = vrot.lane.b32.xlu0 %v768_v42, %s2498_s23 }
 0x208   : > { %v3984_v4 = vpop.permute.xlu1 %912 }
 0x209   : > { %v1210_v1 = vpop.permute.xlu0 %1209 }
 0x20a   : > { %v1518_v51 = vsel %vm1498_vm9, %v1485_v18, %v1210_v1  ;;  %930 = vrot.lane.b32.xlu1 %v867_v29, %s2496_s30  ;;  %v4611_v18 = vld [vmem:[#allocation49_spill] sm:$0xff] }
 0x20b   : > { %831 = vrot.lane.b32.xlu0 %v768_v42, %s2495_s20  ;;  %2314 = vmatmul.mubr.msk.f32.gmra.mxu1 %vm1547_vm10, %v1518_v51  ;;  %v1168_v42 = vsel %vm488_vm1, %v1166_v62, %v1167_v59  ;;  %v1289_v1 = vsel %vm1267_vm2, %v2429_v23, %v4611_v18  ;;  %v4612_v51 = vld [vmem:[#allocation69_spill] sm:$0xff] }
 0x20c   : > { %v3992_v37 = vpop.permute.xlu1 %711 }
 0x20d   : > { %v1009_v0 = vpop.permute.xlu0 %1008 }
 0x20e   : > { %932 = vrot.lane.b32.xlu1 %v869_v50, %s2496_s30  ;;  %v1453_v44 = vsel %vm1432_vm7, %v1420_v17, %v1009_v0 }
 0x20f   : > { %1229 = vrot.lane.b32.xlu0 %v869_v50, %s2499_s28  ;;  %v1322_v50 = vsel %vm1300_vm3, %v1289_v1, %v4612_v51 }
 0x210   : > { %v1111_v58 = vpop.permute.xlu1 %1110  ;;  %v1355_v5 = vsel %vm1333_vm4, %v1322_v50, %v3956_v32 }
 0x211   : > { %v1011_v54 = vpop.permute.xlu0 %1010  ;;  %v1486_v8 = vsel %vm1465_vm8, %v1453_v44, %v1111_v58 }
 0x212   : > { %1030 = vrot.lane.b32.xlu1 %v261_v61, %s2497_s13  ;;  %v2288_v57 = vpop.f32.mrf.mxu0 }
 0x213   : > { %v1716_v10 = vadd.f32 %v2288_v57, %v4003_v63  ;;  %1028 = vrot.lane.b32.xlu0 %v260_v30, %s2497_s13  ;;  %v1388_v30 = vsel %vm1366_vm5, %v1355_v5, %v3977_v21 }
 0x214   : > { %v814_v15 = vpop.permute.xlu1 %813  ;;  %v1710_v31 = vpop.f32.mrf.mxu0  ;;  %v1421_v47 = vsel %vm1399_vm6, %v1388_v30, %v3984_v4 }
 0x215   : > { %1870 = vst.msk [vmem:[%s4012_s27 + $0x8] sm:$0xff] %vm1267_vm2, %v1716_v10  ;;  %v1971_v14 = vmul.f32 %v1716_v10, %v1716_v10  ;;  %v1711_v22 = vadd.f32 %v4003_v63, %v1710_v31  ;;  %v4027_v36 = vpop.permute.xlu0 %713  ;;  %v1902_v13 = vsel %vm1267_vm2, %v1716_v10, 0.0  ;;  %v1454_v52 = vsel %vm1432_vm7, %v1421_v47, %v1011_v54  ;;  %v4614_v10 = vld [vmem:[#allocation71_spill] sm:$0xff] }
 0x216   : > { %1132 = vrot.lane.b32.xlu1 %v1069_v9, %s2498_s23  ;;  %v1323_v9 = vsel %vm1300_vm3, %v1290_v38, %v4614_v10  ;;  %v4618_v10 = vld [vmem:[#allocation72_spill] sm:$0xff] }
 0x217   : > { %1869 = vst.msk [vmem:[%s4012_s27] sm:$0xff] %vm1267_vm2, %v1711_v22  ;;  %v1901_v28 = vsel %vm1267_vm2, %v1711_v22, 0.0  ;;  %v1970_v29 = vmul.f32 %v1711_v22, %v1711_v22  ;;  %1130 = vrot.lane.b32.xlu0 %v1067_v16, %s2498_s23  ;;  %v2003_v3 = vsel %vm1267_vm2, %v1971_v14, 0.0  ;;  %v1356_v31 = vsel %vm1333_vm4, %v1323_v9, %v3992_v37  ;;  %s2430_s23 = scalar_lea.vmem %s2098_s11, 32 }
 0x218   : > { %v1903_v27 = vadd.f32 %v1902_v13, %v1901_v28  ;;  %v1212_v33 = vpop.permute.xlu1 %1211  ;;  %v1389_v14 = vsel %vm1366_vm5, %v1356_v31, %v814_v15  ;;  %p2431_p11 = scmp.ne.s32.totalorder %s2098_s11, %s2430_s23 }
 0x219   : > { %v2002_v55 = vsel %vm1267_vm2, %v1970_v29, 0.0  ;;  %v1519_v11 = vsel %vm1498_vm9, %v1486_v8, %v1212_v33  ;;  %v1113_v48 = vpop.permute.xlu0 %1112 }
 0x21a   : > { %v2004_v2 = vadd.f32 %v2003_v3, %v2002_v55  ;;  %1233 = vrot.lane.b32.xlu1 %v1170_v46, %s2499_s28  ;;  %2316 = vmatprep.mubr.msk.f32.mxu1 %vm1547_vm10, %v1519_v11  ;;  %v1487_v19 = vsel %vm1465_vm8, %v1454_v52, %v1113_v48  ;;  %v4616_v55 = vld [vmem:[#allocation9_spill] sm:$0xff]  ;;  %p2432_p12 = pnand %p2431_p11, %p2564_p5 }
 0x21b   : > { %1231 = vrot.lane.b32.xlu0 %v1168_v42, %s2499_s28  ;;  %v4615_v42 = vld [vmem:[#allocation51_spill] sm:$0xff]  ;;  %s2434_s28 = sshll.u32 %s2500_s19, 4  ;;  %s2435_s28 = int_to_ptr.vmem [resolvable:$false] %s2434_s28 }
 0x21c   : > { %v915_v61 = vpop.permute.xlu1 %914  ;;  %v1291_v3 = vsel %vm1267_vm2, %v3659_v12, %v4615_v42  ;;  %p2433_p13 = pneg %p2432_p12  ;;  %s2436_s8 = scalar_lea.vmem %s2435_s28, 64 }
 0x21d   : > { %v816_v0 = vpop.permute.xlu0 %815  ;;  %v1422_v46 = vsel %vm1399_vm6, %v1389_v14, %v915_v61  ;;  %v1324_v11 = vsel %vm1300_vm3, %v1291_v3, %v4616_v55  ;;  %p2437_p0 = scmp.lt.s32.totalorder %s2098_s11, %s2435_s28  ;;  %p2438_p1 = scmp.lt.s32.totalorder %s2436_s8, %s2430_s23 }
 0x21f   : > { %p2439_p2 = por %p2438_p1, %p2437_p0 }
 0x220   : > { %v917_v58 = vpop.permute.xlu1 %916 }
 0x221   : > { %v1214_v41 = vpop.permute.xlu0 %1213  ;;  %p2440_p3 = pnand %p2439_p2, %p2433_p13 }
 0x222   : > { %v1520_v49 = vsel %vm1498_vm9, %v1487_v19, %v1214_v41 }
 0x223   : > { %2317 = vmatmul.mubr.msk.f32.gmra.mxu1 %vm1547_vm10, %v1520_v49 }
 0x224   : > { %v4061_v32 = vpop.permute.xlu1 %715 }
 0x225   : > { %v1013_v45 = vpop.permute.xlu0 %1012 }
 0x226   : > { %v2291_v59 = vpop.f32.mrf.mxu0  ;;  %v1455_v28 = vsel %vm1432_vm7, %v1422_v46, %v1013_v45 }
 0x227   : > { %v1726_v21 = vadd.f32 %v2291_v59, %v4003_v63 }
 0x228   : > { %v1115_v57 = vpop.permute.xlu1 %1114  ;;  %v1720_v6 = vpop.f32.mrf.mxu0 }
 0x229   : > { %1872 = vst.msk [vmem:[%s4012_s27 + $0x18] sm:$0xff] %vm1267_vm2, %v1726_v21  ;;  %v1721_v4 = vadd.f32 %v4003_v63, %v1720_v6  ;;  %v1015_v54 = vpop.permute.xlu0 %1014  ;;  %v1973_v60 = vmul.f32 %v1726_v21, %v1726_v21  ;;  %v1906_v22 = vsel %vm1267_vm2, %v1726_v21, 0.0  ;;  %v1488_v8 = vsel %vm1465_vm8, %v1455_v28, %v1115_v57  ;;  %v4619_v28 = vld [vmem:[#allocation53_spill] sm:$0xff] }
 0x22b   : > { %1871 = vst.msk [vmem:[%s4012_s27 + $0x10] sm:$0xff] %vm1267_vm2, %v1721_v4  ;;  %v1904_v39 = vsel %vm1267_vm2, %v1721_v4, 0.0  ;;  %v1972_v62 = vmul.f32 %v1721_v4, %v1721_v4  ;;  %v2007_v29 = vsel %vm1267_vm2, %v1973_v60, 0.0  ;;  %v4617_v4 = vld [vmem:[#allocation54_spill] sm:$0xff] }
 0x22c   : > { %v1905_v16 = vadd.f32 %v1904_v39, %v1903_v27  ;;  %v818_v35 = vpop.permute.xlu1 %817 }
 0x22d   : > { %v2005_v56 = vsel %vm1267_vm2, %v1972_v62, 0.0  ;;  %v718_v17 = vpop.permute.xlu0 %717 }
 0x22e   : > { %v2006_v44 = vadd.f32 %v2005_v56, %v2004_v2  ;;  %v1907_v13 = vadd.f32 %v1906_v22, %v1905_v16  ;;  %v1357_v2 = vsel %vm1333_vm4, %v1324_v11, %v4027_v36 }
 0x22f   : > { %v1390_v18 = vsel %vm1366_vm5, %v1357_v2, %v816_v0 }
 0x230   : > { %v1216_v37 = vpop.permute.xlu1 %1215  ;;  %v2008_v27 = vadd.f32 %v2007_v29, %v2006_v44  ;;  %v1423_v1 = vsel %vm1399_vm6, %v1390_v18, %v917_v58  ;;  %v4620_v29 = vld [vmem:[#allocation8_spill] sm:$0xff] }
 0x231   : > { %v1521_v33 = vsel %vm1498_vm9, %v1488_v8, %v1216_v37  ;;  %v1117_v15 = vpop.permute.xlu0 %1116  ;;  %v1456_v51 = vsel %vm1432_vm7, %v1423_v1, %v1015_v54  ;;  %v1292_v54 = vsel %vm1267_vm2, %v3703_v53, %v4617_v4 }
 0x232   : > { %2319 = vmatprep.mubr.msk.f32.mxu1 %vm1547_vm10, %v1521_v33  ;;  %v1489_v61 = vsel %vm1465_vm8, %v1456_v51, %v1117_v15  ;;  %v1325_v9 = vsel %vm1300_vm3, %v1292_v54, %v4618_v10 }
 0x233   : > { %v1358_v39 = vsel %vm1333_vm4, %v1325_v9, %v4061_v32  ;;  %v1293_v32 = vsel %vm1267_vm2, %v3723_v26, %v4619_v28 }
 0x234   : > { %v919_v48 = vpop.permute.xlu1 %918  ;;  %v1391_v16 = vsel %vm1366_vm5, %v1358_v39, %v818_v35  ;;  %v1326_v35 = vsel %vm1300_vm3, %v1293_v32, %v4620_v29 }
 0x235   : > { %v820_v23 = vpop.permute.xlu0 %819  ;;  %v1424_v22 = vsel %vm1399_vm6, %v1391_v16, %v919_v48  ;;  %v1359_v37 = vsel %vm1333_vm4, %v1326_v35, %v718_v17  ;;  %v4624_v16 = vld [vmem:[#allocation73_spill] sm:$0xff] }
 0x236   : > { %v1392_v33 = vsel %vm1366_vm5, %v1359_v37, %v820_v23 }
 0x238   : > { %v921_v50 = vpop.permute.xlu1 %920 }
 0x239   : > { %v1218_v12 = vpop.permute.xlu0 %1217  ;;  %v1425_v42 = vsel %vm1399_vm6, %v1392_v33, %v921_v50 }
 0x23a   : > { %v1522_v5 = vsel %vm1498_vm9, %v1489_v61, %v1218_v12  ;;  %v2294_v30 = vpop.f32.mrf.mxu0 }
 0x23b   : > { %v1736_v47 = vadd.f32 %v2294_v30, %v4003_v63  ;;  %2320 = vmatmul.mubr.msk.f32.gmra.mxu1 %vm1547_vm10, %v1522_v5 }
 0x23c   : > { %v4100_v36 = vpop.permute.xlu1 %719  ;;  %v1730_v52 = vpop.f32.mrf.mxu0 }
 0x23d   : > { %1874 = vst.msk [vmem:[%s4012_s27 + $0x28] sm:$0xff] %vm1267_vm2, %v1736_v47  ;;  %v1731_v0 = vadd.f32 %v4003_v63, %v1730_v52  ;;  %v1017_v58 = vpop.permute.xlu0 %1016  ;;  %v1975_v19 = vmul.f32 %v1736_v47, %v1736_v47  ;;  %v1910_v21 = vsel %vm1267_vm2, %v1736_v47, 0.0 }
 0x23e   : > { %v1457_v56 = vsel %vm1432_vm7, %v1424_v22, %v1017_v58 }
 0x23f   : > { %1873 = vst.msk [vmem:[%s4012_s27 + $0x20] sm:$0xff] %vm1267_vm2, %v1731_v0  ;;  %v1908_v41 = vsel %vm1267_vm2, %v1731_v0, 0.0  ;;  %v1974_v49 = vmul.f32 %v1731_v0, %v1731_v0  ;;  %v2011_v60 = vsel %vm1267_vm2, %v1975_v19, 0.0 }
 0x240   : > { %v1909_v45 = vadd.f32 %v1908_v41, %v1907_v13  ;;  %v1119_v59 = vpop.permute.xlu1 %1118 }
 0x241   : > { %v2009_v57 = vsel %vm1267_vm2, %v1974_v49, 0.0  ;;  %v1019_v6 = vpop.permute.xlu0 %1018  ;;  %v1490_v53 = vsel %vm1465_vm8, %v1457_v56, %v1119_v59  ;;  %v4621_v49 = vld [vmem:[#allocation56_spill] sm:$0xff]  ;;  %v4622_v59 = vld [vmem:[#allocation74_spill] sm:$0xff] }
 0x242   : > { %v2010_v34 = vadd.f32 %v2009_v57, %v2008_v27  ;;  %v1911_v38 = vadd.f32 %v1910_v21, %v1909_v45  ;;  %v1458_v55 = vsel %vm1432_vm7, %v1425_v42, %v1019_v6  ;;  %v1294_v45 = vsel %vm1267_vm2, %v3769_v20, %v4621_v49 }
 0x243   : > { %v1327_v21 = vsel %vm1300_vm3, %v1294_v45, %v4622_v59 }
 0x244   : > { %v822_v62 = vpop.permute.xlu1 %821  ;;  %v2012_v31 = vadd.f32 %v2011_v60, %v2010_v34  ;;  %v1360_v57 = vsel %vm1333_vm4, %v1327_v21, %v4100_v36  ;;  %v4623_v36 = vld [vmem:[#allocation55_spill] sm:$0xff] }
 0x245   : > { %v722_v14 = vpop.permute.xlu0 %721  ;;  %v1393_v4 = vsel %vm1366_vm5, %v1360_v57, %v822_v62  ;;  %v1295_v62 = vsel %vm1267_vm2, %v3783_v7, %v4623_v36  ;;  %v4627_v57 = vld [vmem:[#allocation57_spill] sm:$0xff] }
 0x246   : > { %v1328_v22 = vsel %vm1300_vm3, %v1295_v62, %v4624_v16 }
 0x248   : > { %v1220_v46 = vpop.permute.xlu1 %1219 }
 0x249   : > { %v1523_v44 = vsel %vm1498_vm9, %v1490_v53, %v1220_v46  ;;  %v1121_v13 = vpop.permute.xlu0 %1120  ;;  %v1361_v46 = vsel %vm1333_vm4, %v1328_v22, %v722_v14 }
 0x24a   : > { %2322 = vmatprep.mubr.msk.f32.mxu1 %vm1547_vm10, %v1523_v44  ;;  %v1491_v26 = vsel %vm1465_vm8, %v1458_v55, %v1121_v13 }
 0x24c   : > { %v923_v8 = vpop.permute.xlu1 %922 }
 0x24d   : > { %v824_v27 = vpop.permute.xlu0 %823  ;;  %v1426_v34 = vsel %vm1399_vm6, %v1393_v4, %v923_v8 }
 0x24e   : > { %v2297_v15 = vpop.f32.mrf.mxu0  ;;  %v1394_v28 = vsel %vm1366_vm5, %v1361_v46, %v824_v27 }
 0x24f   : > { %v1746_v3 = vadd.f32 %v2297_v15, %v4003_v63 }
 0x250   : > { %v925_v11 = vpop.permute.xlu1 %924  ;;  %v1740_v48 = vpop.f32.mrf.mxu0 }
 0x251   : > { %1876 = vst.msk [vmem:[%s4012_s27 + $0x38] sm:$0xff] %vm1267_vm2, %v1746_v3  ;;  %v1741_v2 = vadd.f32 %v4003_v63, %v1740_v48  ;;  %v1222_v18 = vpop.permute.xlu0 %1221  ;;  %v1977_v1 = vmul.f32 %v1746_v3, %v1746_v3  ;;  %v1914_v12 = vsel %vm1267_vm2, %v1746_v3, 0.0  ;;  %v1427_v32 = vsel %vm1399_vm6, %v1394_v28, %v925_v11 }
 0x252   : > { %v1524_v17 = vsel %vm1498_vm9, %v1491_v26, %v1222_v18 }
 0x253   : > { %1875 = vst.msk [vmem:[%s4012_s27 + $0x30] sm:$0xff] %vm1267_vm2, %v1741_v2  ;;  %v1912_v23 = vsel %vm1267_vm2, %v1741_v2, 0.0  ;;  %v1976_v51 = vmul.f32 %v1741_v2, %v1741_v2  ;;  %2323 = vmatmul.mubr.msk.f32.gmra.mxu1 %vm1547_vm10, %v1524_v17  ;;  %v2015_v0 = vsel %vm1267_vm2, %v1977_v1, 0.0 }
 0x254   : > { %v1913_v50 = vadd.f32 %v1912_v23, %v1911_v38  ;;  %v724_v61 = vpop.permute.xlu1 %723  ;;  %v4625_v23 = vld [vmem:[#allocation58_spill] sm:$0xff] }
 0x255   : > { %v2013_v5 = vsel %vm1267_vm2, %v1976_v51, 0.0  ;;  %v1021_v30 = vpop.permute.xlu0 %1020  ;;  %v1296_v51 = vsel %vm1267_vm2, %v3829_v24, %v4625_v23 }
 0x256   : > { %v2014_v47 = vadd.f32 %v2013_v5, %v2012_v31  ;;  %v1915_v52 = vadd.f32 %v1914_v12, %v1913_v50  ;;  %v1459_v38 = vsel %vm1432_vm7, %v1426_v34, %v1021_v30  ;;  %v4626_v50 = vld [vmem:[#allocation76_spill] sm:$0xff] }
 0x257   : > { %v1329_v12 = vsel %vm1300_vm3, %v1296_v51, %v4626_v50 }
 0x258   : > { %v1123_v58 = vpop.permute.xlu1 %1122  ;;  %v2016_v19 = vadd.f32 %v2015_v0, %v2014_v47  ;;  %v1362_v5 = vsel %vm1333_vm4, %v1329_v12, %v724_v61 }
 0x259   : > { %v1023_v41 = vpop.permute.xlu0 %1022  ;;  %v1492_v10 = vsel %vm1465_vm8, %v1459_v38, %v1123_v58 }
 0x25a   : > { %v1460_v8 = vsel %vm1432_vm7, %v1427_v32, %v1023_v41 }
 0x25c   : > { %v826_v6 = vpop.permute.xlu1 %825 }
 0x25d   : > { %v4154_v54 = vpop.permute.xlu0 %725  ;;  %v1395_v47 = vsel %vm1366_vm5, %v1362_v5, %v826_v6  ;;  %v1297_v6 = vsel %vm1267_vm2, %v3839_v43, %v4627_v57 }
 0x260   : > { %v1224_v9 = vpop.permute.xlu1 %1223 }
 0x261   : > { %v1525_v20 = vsel %vm1498_vm9, %v1492_v10, %v1224_v9  ;;  %v1125_v60 = vpop.permute.xlu0 %1124  ;;  %v4628_v10 = vld [vmem:[#allocation75_spill] sm:$0xff] }
 0x262   : > { %v2300_v39 = vpop.f32.mrf.mxu0  ;;  %2325 = vmatprep.mubr.msk.f32.mxu1 %vm1547_vm10, %v1525_v20  ;;  %v1493_v14 = vsel %vm1465_vm8, %v1460_v8, %v1125_v60  ;;  %v1330_v9 = vsel %vm1300_vm3, %v1297_v6, %v4628_v10 }
 0x263   : > { %v1756_v31 = vadd.f32 %v2300_v39, %v4003_v63  ;;  %v1363_v39 = vsel %vm1333_vm4, %v1330_v9, %v4154_v54 }
 0x264   : > { %v927_v56 = vpop.permute.xlu1 %926  ;;  %v1750_v53 = vpop.f32.mrf.mxu0 }
 0x265   : > { %1878 = vst.msk [vmem:[%s4012_s27 + $0x48] sm:$0xff] %vm1267_vm2, %v1756_v31  ;;  %v1751_v44 = vadd.f32 %v4003_v63, %v1750_v53  ;;  %v828_v13 = vpop.permute.xlu0 %827  ;;  %v1979_v29 = vmul.f32 %v1756_v31, %v1756_v31  ;;  %v1918_v15 = vsel %vm1267_vm2, %v1756_v31, 0.0  ;;  %v1428_v0 = vsel %vm1399_vm6, %v1395_v47, %v927_v56 }
 0x266   : > { %v1396_v43 = vsel %vm1366_vm5, %v1363_v39, %v828_v13  ;;  %v4629_v13 = vld [vmem:[#allocation59_spill] sm:$0xff] }
 0x267   : > { %1877 = vst.msk [vmem:[%s4012_s27 + $0x40] sm:$0xff] %vm1267_vm2, %v1751_v44  ;;  %v1916_v7 = vsel %vm1267_vm2, %v1751_v44, 0.0  ;;  %v1978_v35 = vmul.f32 %v1751_v44, %v1751_v44  ;;  %v2019_v48 = vsel %vm1267_vm2, %v1979_v29, 0.0  ;;  %v1299_v8 = vsel %vm1267_vm2, %v3898_v40, %v4629_v13 }
 0x268   : > { %v1917_v37 = vadd.f32 %v1916_v7, %v1915_v52  ;;  %v929_v33 = vpop.permute.xlu1 %928 }
 0x269   : > { %v2017_v42 = vsel %vm1267_vm2, %v1978_v35, 0.0  ;;  %v1226_v3 = vpop.permute.xlu0 %1225  ;;  %v1429_v56 = vsel %vm1399_vm6, %v1396_v43, %v929_v33 }
 0x26a   : > { %v2018_v27 = vadd.f32 %v2017_v42, %v2016_v19  ;;  %v1526_v55 = vsel %vm1498_vm9, %v1493_v14, %v1226_v3  ;;  %v1919_v11 = vadd.f32 %v1918_v15, %v1917_v37  ;;  %v4630_v37 = vld [vmem:[#allocation60_spill] sm:$0xff]  ;;  %v4631_v14 = vld [vmem:[#allocation77_spill] sm:$0xff]  ;;  %v4632_v42 = vld [vmem:[#allocation78_spill] sm:$0xff] }
 0x26b   : > { %2326 = vmatmul.mubr.msk.f32.gmra.mxu1 %vm1547_vm10, %v1526_v55  ;;  %v1298_v33 = vsel %vm1267_vm2, %v3886_v25, %v4630_v37  ;;  %v1332_v15 = vsel %vm1300_vm3, %v1299_v8, %v4631_v14 }
 0x26c   : > { %v728_v26 = vpop.permute.xlu1 %727  ;;  %v2020_v2 = vadd.f32 %v2019_v48, %v2018_v27  ;;  %v1331_v3 = vsel %vm1300_vm3, %v1298_v33, %v4632_v42 }
 0x26d   : > { %v1025_v18 = vpop.permute.xlu0 %1024 }
 0x26e   : > { %v1461_v19 = vsel %vm1432_vm7, %v1428_v0, %v1025_v18 }
 0x270   : > { %v1127_v17 = vpop.permute.xlu1 %1126 }
 0x271   : > { %v1027_v1 = vpop.permute.xlu0 %1026  ;;  %v1494_v49 = vsel %vm1465_vm8, %v1461_v19, %v1127_v17 }
 0x272   : > { %v1462_v46 = vsel %vm1432_vm7, %v1429_v56, %v1027_v1 }
 0x274   : > { %v830_v30 = vpop.permute.xlu1 %829 }
 0x275   : > { %v730_v52 = vpop.permute.xlu0 %729 }
 0x276   : > { %v2303_v58 = vpop.f32.mrf.mxu0  ;;  %v1365_v27 = vsel %vm1333_vm4, %v1332_v15, %v730_v52 }
 0x277   : > { %v1766_v41 = vadd.f32 %v2303_v58, %v4003_v63 }
 0x278   : > { %v1228_v24 = vpop.permute.xlu1 %1227  ;;  %v1760_v45 = vpop.f32.mrf.mxu0 }
 0x279   : > { %1880 = vst.msk [vmem:[%s4012_s27 + $0x58] sm:$0xff] %vm1267_vm2, %v1766_v41  ;;  %v1527_v61 = vsel %vm1498_vm9, %v1494_v49, %v1228_v24  ;;  %v1761_v59 = vadd.f32 %v4003_v63, %v1760_v45  ;;  %v1129_v21 = vpop.permute.xlu0 %1128  ;;  %v1981_v4 = vmul.f32 %v1766_v41, %v1766_v41  ;;  %v1922_v36 = vsel %vm1267_vm2, %v1766_v41, 0.0 }
 0x27a   : > { %2328 = vmatprep.mubr.msk.f32.mxu1 %vm1547_vm10, %v1527_v61  ;;  %v1495_v32 = vsel %vm1465_vm8, %v1462_v46, %v1129_v21 }
 0x27b   : > { %1879 = vst.msk [vmem:[%s4012_s27 + $0x50] sm:$0xff] %vm1267_vm2, %v1761_v59  ;;  %v1920_v34 = vsel %vm1267_vm2, %v1761_v59, 0.0  ;;  %v1980_v38 = vmul.f32 %v1761_v59, %v1761_v59  ;;  %v2023_v53 = vsel %vm1267_vm2, %v1981_v4, 0.0 }
 0x27c   : > { %v1921_v20 = vadd.f32 %v1920_v34, %v1919_v11  ;;  %v931_v60 = vpop.permute.xlu1 %930  ;;  %v1364_v11 = vsel %vm1333_vm4, %v1331_v3, %v728_v26 }
 0x27d   : > { %v2021_v62 = vsel %vm1267_vm2, %v1980_v38, 0.0  ;;  %v832_v31 = vpop.permute.xlu0 %831  ;;  %v1397_v40 = vsel %vm1366_vm5, %v1364_v11, %v830_v30 }
 0x27e   : > { %v2022_v16 = vadd.f32 %v2021_v62, %v2020_v2  ;;  %v1923_v22 = vadd.f32 %v1922_v36, %v1921_v20  ;;  %v1398_v48 = vsel %vm1366_vm5, %v1365_v27, %v832_v31  ;;  %v1430_v17 = vsel %vm1399_vm6, %v1397_v40, %v931_v60 }
 0x280   : > { %v933_v44 = vpop.permute.xlu1 %932  ;;  %v2024_v28 = vadd.f32 %v2023_v53, %v2022_v16 }
 0x281   : > { %v1230_v54 = vpop.permute.xlu0 %1229  ;;  %v1431_v18 = vsel %vm1399_vm6, %v1398_v48, %v933_v44 }
 0x282   : > { %v1528_v29 = vsel %vm1498_vm9, %v1495_v32, %v1230_v54 }
 0x283   : > { %2329 = vmatmul.mubr.msk.f32.gmra.mxu1 %vm1547_vm10, %v1528_v29 }
 0x284   : > { %v1031_v7 = vpop.permute.xlu1 %1030 }
 0x285   : > { %v1029_v35 = vpop.permute.xlu0 %1028  ;;  %v1464_v1 = vsel %vm1432_vm7, %v1431_v18, %v1031_v7 }
 0x286   : > { %v1463_v51 = vsel %vm1432_vm7, %v1430_v17, %v1029_v35 }
 0x288   : > { %v1133_v55 = vpop.permute.xlu1 %1132 }
 0x289   : > { %v1131_v2 = vpop.permute.xlu0 %1130  ;;  %v1497_v50 = vsel %vm1465_vm8, %v1464_v1, %v1133_v55 }
 0x28a   : > { %v2306_v25 = vpop.f32.mrf.mxu0  ;;  %v1496_v5 = vsel %vm1465_vm8, %v1463_v51, %v1131_v2 }
 0x28b   : > { %v1776_v23 = vadd.f32 %v2306_v25, %v4003_v63 }
 0x28c   : > { %v1234_v26 = vpop.permute.xlu1 %1233  ;;  %v1770_v12 = vpop.f32.mrf.mxu0 }
 0x28d   : > { %1882 = vst.msk [vmem:[%s4012_s27 + $0x68] sm:$0xff] %vm1267_vm2, %v1776_v23  ;;  %v1530_v30 = vsel %vm1498_vm9, %v1497_v50, %v1234_v26  ;;  %v1771_v47 = vadd.f32 %v4003_v63, %v1770_v12  ;;  %v1232_v52 = vpop.permute.xlu0 %1231  ;;  %v1983_v58 = vmul.f32 %v1776_v23, %v1776_v23  ;;  %v1926_v24 = vsel %vm1267_vm2, %v1776_v23, 0.0 }
 0x28e   : > { %v1529_v0 = vsel %vm1498_vm9, %v1496_v5, %v1232_v52 }
 0x28f   : > { %1881 = vst.msk [vmem:[%s4012_s27 + $0x60] sm:$0xff] %vm1267_vm2, %v1771_v47  ;;  %v1924_v19 = vsel %vm1267_vm2, %v1771_v47, 0.0  ;;  %v1982_v41 = vmul.f32 %v1771_v47, %v1771_v47  ;;  %2331 = vmatprep.mubr.msk.f32.mxu1 %vm1547_vm10, %v1529_v0  ;;  %v2027_v21 = vsel %vm1267_vm2, %v1983_v58, 0.0 }
 0x290   : > { %v1925_v49 = vadd.f32 %v1924_v19, %v1923_v22  ;;  %2332 = vmatmul.mubr.msk.f32.gmra.mxu1 %vm1547_vm10, %v1530_v30 }
 0x291   : > { %v2025_v45 = vsel %vm1267_vm2, %v1982_v41, 0.0 }
 0x292   : > { %v2026_v61 = vadd.f32 %v2025_v45, %v2024_v28  ;;  %v1927_v59 = vadd.f32 %v1926_v24, %v1925_v49 }
 0x294   : > { %v2028_v57 = vadd.f32 %v2027_v21, %v2026_v61 }
 0x29e   : > { %v2309_v6 = vpop.f32.mrf.mxu0 }
 0x29f   : > { %v1786_v4 = vadd.f32 %v2309_v6, %v4003_v63 }
 0x2a0   : > { %v1780_v34 = vpop.f32.mrf.mxu0 }
 0x2a1   : > { %1884 = vst.msk [vmem:[%s4012_s27 + $0x78] sm:$0xff] %vm1267_vm2, %v1786_v4  ;;  %v1781_v38 = vadd.f32 %v4003_v63, %v1780_v34  ;;  %v1985_v10 = vmul.f32 %v1786_v4, %v1786_v4  ;;  %v1930_v39 = vsel %vm1267_vm2, %v1786_v4, 0.0 }
 0x2a3   : > { %1883 = vst.msk [vmem:[%s4012_s27 + $0x70] sm:$0xff] %vm1267_vm2, %v1781_v38  ;;  %v1928_v9 = vsel %vm1267_vm2, %v1781_v38, 0.0  ;;  %v1984_v20 = vmul.f32 %v1781_v38, %v1781_v38  ;;  %v2031_v43 = vsel %vm1267_vm2, %v1985_v10, 0.0 }
 0x2a4   : > { %v1929_v60 = vadd.f32 %v1928_v9, %v1927_v59 }
 0x2a5   : > { %v2029_v36 = vsel %vm1267_vm2, %v1984_v20, 0.0 }
 0x2a6   : > { %v2030_v62 = vadd.f32 %v2029_v36, %v2028_v57  ;;  %v1931_v31 = vadd.f32 %v1930_v39, %v1929_v60 }
 0x2a8   : > { %v2032_v16 = vadd.f32 %v2031_v43, %v2030_v62 }
 0x2b2   : > { %v2312_v22 = vpop.f32.mrf.mxu1 }
 0x2b3   : > { %v1796_v56 = vadd.f32 %v2312_v22, %v4003_v63 }
 0x2b4   : > { %v1790_v53 = vpop.f32.mrf.mxu1 }
 0x2b5   : > { %1886 = vst.msk [vmem:[%s4012_s27 + $0x88] sm:$0xff] %vm1267_vm2, %v1796_v56  ;;  %v1791_v46 = vadd.f32 %v4003_v63, %v1790_v53  ;;  %v1987_v44 = vmul.f32 %v1796_v56, %v1796_v56  ;;  %v1934_v29 = vsel %vm1267_vm2, %v1796_v56, 0.0 }
 0x2b7   : > { %1885 = vst.msk [vmem:[%s4012_s27 + $0x80] sm:$0xff] %vm1267_vm2, %v1791_v46  ;;  %v1932_v28 = vsel %vm1267_vm2, %v1791_v46, 0.0  ;;  %v1986_v32 = vmul.f32 %v1791_v46, %v1791_v46  ;;  %v2035_v8 = vsel %vm1267_vm2, %v1987_v44, 0.0 }
 0x2b8   : > { %v1933_v54 = vadd.f32 %v1932_v28, %v1931_v31 }
 0x2b9   : > { %v2033_v7 = vsel %vm1267_vm2, %v1986_v32, 0.0 }
 0x2ba   : > { %v2034_v35 = vadd.f32 %v2033_v7, %v2032_v16  ;;  %v1935_v13 = vadd.f32 %v1934_v29, %v1933_v54 }
 0x2bc   : > { %v2036_v37 = vadd.f32 %v2035_v8, %v2034_v35 }
 0x2cb   : > { %v2315_v33 = vpop.f32.mrf.mxu1 }
 0x2cc   : > { %v1806_v14 = vadd.f32 %v2315_v33, %v4003_v63 }
 0x2cd   : > { %v1800_v15 = vpop.f32.mrf.mxu1 }
 0x2ce   : > { %1888 = vst.msk [vmem:[%s4012_s27 + $0x98] sm:$0xff] %vm1267_vm2, %v1806_v14  ;;  %v1801_v42 = vadd.f32 %v4003_v63, %v1800_v15  ;;  %v1989_v3 = vmul.f32 %v1806_v14, %v1806_v14  ;;  %v1938_v48 = vsel %vm1267_vm2, %v1806_v14, 0.0 }
 0x2d0   : > { %1887 = vst.msk [vmem:[%s4012_s27 + $0x90] sm:$0xff] %vm1267_vm2, %v1801_v42  ;;  %v1936_v27 = vsel %vm1267_vm2, %v1801_v42, 0.0  ;;  %v1988_v55 = vmul.f32 %v1801_v42, %v1801_v42  ;;  %v2039_v25 = vsel %vm1267_vm2, %v1989_v3, 0.0 }
 0x2d1   : > { %v1937_v11 = vadd.f32 %v1936_v27, %v1935_v13 }
 0x2d2   : > { %v2037_v2 = vsel %vm1267_vm2, %v1988_v55, 0.0 }
 0x2d3   : > { %v2038_v40 = vadd.f32 %v2037_v2, %v2036_v37  ;;  %v1939_v18 = vadd.f32 %v1938_v48, %v1937_v11 }
 0x2d5   : > { %v2040_v17 = vadd.f32 %v2039_v25, %v2038_v40 }
 0x2e3   : > { %v2318_v1 = vpop.f32.mrf.mxu1 }
 0x2e4   : > { %v1816_v23 = vadd.f32 %v2318_v1, %v4003_v63 }
 0x2e5   : > { %v1810_v51 = vpop.f32.mrf.mxu1 }
 0x2e6   : > { %1890 = vst.msk [vmem:[%s4012_s27 + $0xa8] sm:$0xff] %vm1267_vm2, %v1816_v23  ;;  %v1811_v50 = vadd.f32 %v4003_v63, %v1810_v51  ;;  %v1991_v26 = vmul.f32 %v1816_v23, %v1816_v23  ;;  %v1942_v47 = vsel %vm1267_vm2, %v1816_v23, 0.0 }
 0x2e8   : > { %1889 = vst.msk [vmem:[%s4012_s27 + $0xa0] sm:$0xff] %vm1267_vm2, %v1811_v50  ;;  %v1940_v12 = vsel %vm1267_vm2, %v1811_v50, 0.0  ;;  %v1990_v5 = vmul.f32 %v1811_v50, %v1811_v50  ;;  %v2043_v19 = vsel %vm1267_vm2, %v1991_v26, 0.0 }
 0x2e9   : > { %v1941_v30 = vadd.f32 %v1940_v12, %v1939_v18 }
 0x2ea   : > { %v2041_v52 = vsel %vm1267_vm2, %v1990_v5, 0.0 }
 0x2eb   : > { %v2042_v0 = vadd.f32 %v2041_v52, %v2040_v17  ;;  %v1943_v58 = vadd.f32 %v1942_v47, %v1941_v30 }
 0x2ed   : > { %v2044_v41 = vadd.f32 %v2043_v19, %v2042_v0 }
 0x2fb   : > { %v2321_v49 = vpop.f32.mrf.mxu1 }
 0x2fc   : > { %v1826_v24 = vadd.f32 %v2321_v49, %v4003_v63 }
 0x2fd   : > { %v1820_v45 = vpop.f32.mrf.mxu1 }
 0x2fe   : > { %1892 = vst.msk [vmem:[%s4012_s27 + $0xb8] sm:$0xff] %vm1267_vm2, %v1826_v24  ;;  %v1821_v61 = vadd.f32 %v4003_v63, %v1820_v45  ;;  %v1993_v59 = vmul.f32 %v1826_v24, %v1826_v24  ;;  %v1946_v4 = vsel %vm1267_vm2, %v1826_v24, 0.0 }
 0x300   : > { %1891 = vst.msk [vmem:[%s4012_s27 + $0xb0] sm:$0xff] %vm1267_vm2, %v1821_v61  ;;  %v1944_v21 = vsel %vm1267_vm2, %v1821_v61, 0.0  ;;  %v1992_v57 = vmul.f32 %v1821_v61, %v1821_v61  ;;  %v2047_v9 = vsel %vm1267_vm2, %v1993_v59, 0.0 }
 0x301   : > { %v1945_v6 = vadd.f32 %v1944_v21, %v1943_v58 }
 0x302   : > { %v2045_v34 = vsel %vm1267_vm2, %v1992_v57, 0.0 }
 0x303   : > { %v2046_v38 = vadd.f32 %v2045_v34, %v2044_v41  ;;  %v1947_v10 = vadd.f32 %v1946_v4, %v1945_v6 }
 0x305   : > { %v2048_v20 = vadd.f32 %v2047_v9, %v2046_v38 }
 0x313   : > { %v2324_v60 = vpop.f32.mrf.mxu1 }
 0x314   : > { %v1836_v39 = vadd.f32 %v2324_v60, %v4003_v63 }
 0x315   : > { %v1830_v36 = vpop.f32.mrf.mxu1 }
 0x316   : > { %1894 = vst.msk [vmem:[%s4012_s27 + $0xc8] sm:$0xff] %vm1267_vm2, %v1836_v39  ;;  %v1831_v62 = vadd.f32 %v4003_v63, %v1830_v36  ;;  %v1995_v54 = vmul.f32 %v1836_v39, %v1836_v39  ;;  %v1950_v8 = vsel %vm1267_vm2, %v1836_v39, 0.0 }
 0x318   : > { %1893 = vst.msk [vmem:[%s4012_s27 + $0xc0] sm:$0xff] %vm1267_vm2, %v1831_v62  ;;  %v1994_v56 = vmul.f32 %v1831_v62, %v1831_v62  ;;  %v1948_v53 = vsel %vm1267_vm2, %v1831_v62, 0.0  ;;  %v2051_v14 = vsel %vm1267_vm2, %v1995_v54, 0.0 }
 0x319   : > { %v1949_v28 = vadd.f32 %v1948_v53, %v1947_v10 }
 0x31a   : > { %v2049_v46 = vsel %vm1267_vm2, %v1994_v56, 0.0 }
 0x31b   : > { %v2050_v35 = vadd.f32 %v2049_v46, %v2048_v20  ;;  %v1951_v33 = vadd.f32 %v1950_v8, %v1949_v28 }
 0x31d   : > { %v2052_v3 = vadd.f32 %v2051_v14, %v2050_v35 }
 0x32b   : > { %v2327_v31 = vpop.f32.mrf.mxu1 }
 0x32c   : > { %v1846_v43 = vadd.f32 %v2327_v31, %v4003_v63 }
 0x32d   : > { %v1840_v16 = vpop.f32.mrf.mxu1 }
 0x32e   : > { %1896 = vst.msk [vmem:[%s4012_s27 + $0xd8] sm:$0xff] %vm1267_vm2, %v1846_v43  ;;  %v1841_v22 = vadd.f32 %v4003_v63, %v1840_v16  ;;  %v1997_v27 = vmul.f32 %v1846_v43, %v1846_v43  ;;  %v1954_v48 = vsel %vm1267_vm2, %v1846_v43, 0.0 }
 0x330   : > { %1895 = vst.msk [vmem:[%s4012_s27 + $0xd0] sm:$0xff] %vm1267_vm2, %v1841_v22  ;;  %v1996_v29 = vmul.f32 %v1841_v22, %v1841_v22  ;;  %v1952_v37 = vsel %vm1267_vm2, %v1841_v22, 0.0  ;;  %v2055_v18 = vsel %vm1267_vm2, %v1997_v27, 0.0 }
 0x331   : > { %v1953_v42 = vadd.f32 %v1952_v37, %v1951_v33 }
 0x332   : > { %v2053_v15 = vsel %vm1267_vm2, %v1996_v29, 0.0 }
 0x333   : > { %v2054_v11 = vadd.f32 %v2053_v15, %v2052_v3  ;;  %v1955_v40 = vadd.f32 %v1954_v48, %v1953_v42 }
 0x335   : > { %v2056_v1 = vadd.f32 %v2055_v18, %v2054_v11 }
 0x343   : > { %v2330_v44 = vpop.f32.mrf.mxu1 }
 0x344   : > { %v1856_v32 = vadd.f32 %v2330_v44, %v4003_v63 }
 0x345   : > { %v1850_v7 = vpop.f32.mrf.mxu1 }
 0x346   : > { %1898 = vst.msk [vmem:[%s4012_s27 + $0xe8] sm:$0xff] %vm1267_vm2, %v1856_v32  ;;  %v1851_v13 = vadd.f32 %v4003_v63, %v1850_v7  ;;  %v1999_v51 = vmul.f32 %v1856_v32, %v1856_v32  ;;  %v1958_v5 = vsel %vm1267_vm2, %v1856_v32, 0.0 }
 0x348   : > { %1897 = vst.msk [vmem:[%s4012_s27 + $0xe0] sm:$0xff] %vm1267_vm2, %v1851_v13  ;;  %v1998_v55 = vmul.f32 %v1851_v13, %v1851_v13  ;;  %v1956_v2 = vsel %vm1267_vm2, %v1851_v13, 0.0  ;;  %v2059_v52 = vsel %vm1267_vm2, %v1999_v51, 0.0 }
 0x349   : > { %v1957_v17 = vadd.f32 %v1956_v2, %v1955_v40 }
 0x34a   : > { %v2057_v25 = vsel %vm1267_vm2, %v1998_v55, 0.0 }
 0x34b   : > { %v2058_v26 = vadd.f32 %v2057_v25, %v2056_v1  ;;  %v1959_v47 = vadd.f32 %v1958_v5, %v1957_v17 }
 0x34d   : > { %v2060_v49 = vadd.f32 %v2059_v52, %v2058_v26 }
 0x350   : > { %v2333_v23 = vpop.f32.mrf.mxu1 }
 0x351   : > { %v1866_v50 = vadd.f32 %v2333_v23, %v4003_v63 }
 0x352   : > { %v1860_v12 = vpop.f32.mrf.mxu1 }
 0x353   : > { %1900 = vst.msk [vmem:[%s4012_s27 + $0xf8] sm:$0xff] %vm1267_vm2, %v1866_v50  ;;  %v1861_v30 = vadd.f32 %v4003_v63, %v1860_v12  ;;  %v2001_v0 = vmul.f32 %v1866_v50, %v1866_v50  ;;  %v1962_v24 = vsel %vm1267_vm2, %v1866_v50, 0.0 }
 0x355   : > { %1899 = vst.msk [vmem:[%s4012_s27 + $0xf0] sm:$0xff] %vm1267_vm2, %v1861_v30  ;;  %v1960_v58 = vsel %vm1267_vm2, %v1861_v30, 0.0  ;;  %v2000_v19 = vmul.f32 %v1861_v30, %v1861_v30  ;;  %v2063_v63 = vsel %vm1267_vm2, %v2001_v0, 0.0 }
 0x356   : > { %v1961_v41 = vadd.f32 %v1960_v58, %v1959_v47 }
 0x357   : > { %v2061_v45 = vsel %vm1267_vm2, %v2000_v19, 0.0 }
 0x358   : > { %v1963_v61 = vadd.f32 %v1962_v24, %v1961_v41  ;;  %v2062_v59 = vadd.f32 %v2061_v45, %v2060_v49 }
 0x35a   : > { %v1964_v21 = vrot.slane %v1963_v61, 4  ;;  %v2064_v57 = vadd.f32 %v2063_v63, %v2062_v59 }
 0x35c   : > { %v1965_v6 = vadd.f32 %v1964_v21, %v1963_v61  ;;  %v2065_v4 = vrot.slane %v2064_v57, 4 }
 0x35e   : > { %v1966_v34 = vrot.slane %v1965_v6, 2  ;;  %v2066_v38 = vadd.f32 %v2065_v4, %v2064_v57 }
 0x360   : > { %v1967_v10 = vadd.f32 %v1966_v34, %v1965_v6  ;;  %v2067_v9 = vrot.slane %v2066_v38, 2 }
 0x362   : > { %v1968_v20 = vrot.slane %v1967_v10, 1  ;;  %v2068_v60 = vadd.f32 %v2067_v9, %v2066_v38 }
 0x364   : > { %v2069_v39 = vrot.slane %v2068_v60, 1  ;;  %v1969_v36 = vadd.f32 %v1968_v20, %v1967_v10 }
 0x366   : > { %v2070_v62 = vadd.f32 %v2069_v39, %v2068_v60 }
 0x368   : > { %v2072_v31 = vsel %vm2071_vm11, %v1969_v36, %v2070_v62 }
 0x369   : > { %2074 = vst.msk [vmem:[%s198_s10] sm:$0x3] %vm2073_vm12, %v2072_v31 }
 0x36a   : > { %2443 = shalt.err (!%p2440_p3)
}
 0x36b   : > { %s2444_s20 = scalar_lea.hbm %s4347_s14, 32  ;;  %s2448_s6 = scalar_lea.hbm %s4386_s4, 64 }
 0x36c   : > { %p2445_p4 = scmp.ne.s32.totalorder %s4347_s14, %s2444_s20  ;;  %p2449_p9 = scmp.lt.s32.totalorder %s4347_s14, %s4386_s4 }
 0x36d   : > { %p2450_p10 = scmp.lt.s32.totalorder %s2448_s6, %s2444_s20 }
 0x36e   : > { %p2446_p7 = pnand %p2445_p4, %p2564_p5 }
 0x36f   : > { %p2451_p11 = por %p2450_p10, %p2449_p9 }
 0x370   : > { %p2447_p8 = pneg %p2446_p7 }
 0x372   : > { %p2452_p12 = pnand %p2451_p11, %p2447_p8 }
 0x374   : > { %2455 = shalt.err (!%p2452_p12)
}
 0x375   : > { %2353 = dma.vmem_to_hbm [thread:$0]  (%p2564_p5), %s2098_s11, 32, %s4347_s14, %s2081_s22  }
 0x376 PF: > { %p2359_p13 = scmp.ge.s32.totalorder %s2490_s18, 2  ;;  %s2117_s7 = sand.u32 1, %s2478_s15  }
 0x377   : > { %s2118_s9 = scalar_lea.sflag [#allocation3], %s2117_s7 }
 0x378   : > { %p2356_p0 = pnand %p2359_p13, %p2568_p6 }
 0x37a   : > { %p2357_p1 = pneg %p2356_p0 }
 0x37c   : > { %2473 = dma.done.wait (%p2357_p1), %s2118_s9, 32  }
 0x37d   : > { %2475 = vsyncadd (%p2357_p1), %s2118_s9, 4294967264  ;;  %p15_p2 = scmp.ge.s32.totalorder %s2551_s21, 4   ;;  %s4633_s15 = smov %s2482_s16 }
 0x37e   : > { %s4634_s16 = smov %s2486_s17  ;;  %s4635_s17 = smov %s2562_s24 }
 0x37f   : > { %s4636_s18 = smov %s2551_s21  ;;  %17 = sbr.rel (!%p15_p2) target bundleno = 3 (0x3), region = 79 }
 0x384   :  { %2123 = vsyncpa [#allocation3], 1 }
 0x385   :  { %2125 = vsyncpa [#allocation3 + $0x1], 1 }

</bundles_post_ra>
